<compile_context>
chip_gen: v5e
topology: v5e:2x2
jax: 0.10.0
libtpu: 0.0.40
codegen_flags: <defaults>
</compile_context>

<pallas_src>
import functools

import jax
import jax.numpy as jnp
from jax import lax
from jax.experimental import pallas as pl
from jax.experimental.pallas import tpu as pltpu


# --------------------------------------------------------------------------
# Fused Pallas kernel: variance + cost-reg + softmax + depth / confidence
# --------------------------------------------------------------------------
def _fused_depth_kernel(has_init, w_ref, b_ref, vol_ref, waug_ref, *rest):
    """Per (batch, HW-tile):

    w_ref    : (C,)            SMEM   1x1x1 conv weight
    b_ref    : (1,)            SMEM   1x1x1 conv bias
    vol_ref  : (V, C, D, THW)  VMEM   bf16 warped feature volumes
    waug_ref : (D+2, D)        VMEM   [banded sum4 ; depth_values ; arange(D)]
    init_ref : (D, THW)        VMEM   optional prob_volume_init tile
    depth_ref: (1, 1, THW)     VMEM   regressed depth
    conf_ref : (1, 1, THW)     VMEM   photometric confidence
    """
    if has_init:
        init_ref, depth_ref, conf_ref = rest
    else:
        init_ref = None
        depth_ref, conf_ref = rest

    V, C, D, THW = vol_ref.shape
    inv_v = jnp.float32(1.0 / V)

    # Variance over views + channel-weighted reduction (== Conv3d(C, 1, k=1)).
    # Per-channel loop keeps only (D, THW)-sized f32 temporaries live, so the
    # bf16 input tile dominates the VMEM footprint.
    cost = jnp.full((D, THW), b_ref[0], dtype=jnp.float32)
    for c in range(C):
        s = jnp.zeros((D, THW), jnp.float32)
        sq = jnp.zeros((D, THW), jnp.float32)
        for v in range(V):
            x = vol_ref[v, c].astype(jnp.float32)
            s = s + x
            sq = sq + x * x
        var_c = sq * inv_v - (s * inv_v) ** 2
        cost = cost + var_c * w_ref[c]

    if has_init:
        cost = cost + init_ref[...]

    # softmax over the depth axis (dim=1 of the NCHW prob volume)
    m = jnp.max(cost, axis=0, keepdims=True)
    e = jnp.exp(cost - m)
    l = jnp.sum(e, axis=0, keepdims=True)
    p = e * pl.reciprocal(l, approx=True)                    # (D, THW)

    # One augmented matmul on the MXU:
    #   rows [0, D) : banded 4-window sum   -> prob_volume_sum4
    #   row  D      : depth_values          -> depth regression
    #   row  D+1    : arange(D)             -> depth-index numerator
    aug = jnp.dot(waug_ref[...], p, preferred_element_type=jnp.float32)
    sum4 = aug[:D]                                           # (D, THW)
    depth = aug[D:D + 1]                                     # (1, THW)
    didx = jnp.clip(aug[D + 1:D + 2].astype(jnp.int32), 0, D - 1)

    # gather(prob_volume_sum4, dim=depth, index=didx) via one-hot select
    onehot = lax.broadcasted_iota(jnp.int32, (D, THW), 0) == didx
    conf = jnp.sum(sum4 * onehot.astype(jnp.float32), axis=0, keepdims=True)

    depth_ref[...] = depth[None]
    conf_ref[...] = conf[None]


# --------------------------------------------------------------------------
# Pallas wrapper
# --------------------------------------------------------------------------
def _choose_hw_tile(hw, col_bytes, budget_bytes=8 * 1024 * 1024):
    """Largest multiple-of-128 divisor of `hw` whose double-buffered input
    tile fits `budget_bytes`; falls back to the full extent."""
    max_cols = max(budget_bytes // max(col_bytes, 1), 128)
    best = 0
    t = 128
    limit = min(hw, max_cols)
    while t <= limit:
        if hw % t == 0:
            best = t
        t += 128
    return best if best > 0 else hw


def fused_cost_softmax_depth(vols, cost_w, cost_b, waug, prob_volume_init=None):
    """vols: [V, B, C, D, HW] (bf16) -> (depth [B,1,HW], confidence [B,1,HW])."""
    V, B, C, D, HW = vols.shape
    has_init = prob_volume_init is not None

    # bytes per HW column: double-buffered bf16 tile + a few f32 (D,·) slabs
    col_bytes = 4 * V * C * D + 16 * D
    thw = _choose_hw_tile(HW, col_bytes)
    grid = (B, HW // thw)

    in_specs = [
        pl.BlockSpec(memory_space=pltpu.MemorySpace.SMEM),                 # cost_w
        pl.BlockSpec(memory_space=pltpu.MemorySpace.SMEM),                 # cost_b
        pl.BlockSpec((V, pl.Squeezed(), C, D, thw),
                     lambda b, t: (0, b, 0, 0, t)),                        # volumes
        pl.BlockSpec((pl.Squeezed(), D + 2, D), lambda b, t: (b, 0, 0)),   # waug
    ]
    args = [cost_w.reshape(C).astype(jnp.float32),
            cost_b.reshape(1).astype(jnp.float32),
            vols, waug.astype(jnp.float32)]
    if has_init:
        in_specs.append(pl.BlockSpec((pl.Squeezed(), D, thw),
                                     lambda b, t: (b, 0, t)))
        args.append(prob_volume_init.reshape(B, D, HW).astype(jnp.float32))

    depth, conf = pl.pallas_call(
        functools.partial(_fused_depth_kernel, has_init),
        out_shape=(jax.ShapeDtypeStruct((B, 1, HW), jnp.float32),
                   jax.ShapeDtypeStruct((B, 1, HW), jnp.float32)),
        grid=grid,
        in_specs=in_specs,
        out_specs=(pl.BlockSpec((1, 1, thw), lambda b, t: (b, 0, t)),
                   pl.BlockSpec((1, 1, thw), lambda b, t: (b, 0, t))),
        compiler_params=pltpu.CompilerParams(
            dimension_semantics=("parallel", "parallel"),
            vmem_limit_bytes=32 * 1024 * 1024),
    )(*args)
    return depth, conf


def _build_depth_weights(depth_values):
    """[B, D] depth hypotheses -> [B, D+2, D] augmented regression weights."""
    B, D = depth_values.shape
    rows = lax.broadcasted_iota(jnp.int32, (D, D), 0)
    cols = lax.broadcasted_iota(jnp.int32, (D, D), 1)
    # prob_volume_sum4 = 4 * avg_pool3d(pad(p, depth:(1,2)), (4,1,1))
    #                  = sum of probs over window [d-1, d+2]  (zeros outside)
    w4 = ((cols >= rows - 1) & (cols <= rows + 2)).astype(jnp.float32)
    return jnp.concatenate([
        jnp.broadcast_to(w4[None], (B, D, D)),
        depth_values.astype(jnp.float32)[:, None, :],
        jnp.broadcast_to(jnp.arange(D, dtype=jnp.float32)[None, None, :],
                         (B, 1, D)),
    ], axis=1)


# --------------------------------------------------------------------------
# JAX glue: homography warping (grid_sample) and projection algebra
# --------------------------------------------------------------------------
def _bilinear_sample_zeros(fea, px, py):
    """Bilinear sample fea [C,H,W] at pixel coords px,py [D,HW] (zero padding,
    align_corners=True pixel convention)."""
    C, H, W = fea.shape
    fea_flat = fea.reshape(C, H * W)
    x0f = jnp.floor(px)
    y0f = jnp.floor(py)
    wx1 = px - x0f
    wy1 = py - y0f
    wx0 = 1.0 - wx1
    wy0 = 1.0 - wy1

    def tap(xf, yf, wgt):
        inb = (xf >= 0) & (xf <= W - 1) & (yf >= 0) & (yf <= H - 1)
        xi = jnp.clip(xf, 0, W - 1).astype(jnp.int32)
        yi = jnp.clip(yf, 0, H - 1).astype(jnp.int32)
        idx = (yi * W + xi).reshape(-1)
        vals = jnp.take(fea_flat, idx, axis=1).reshape(C, *px.shape)
        return vals * (wgt * inb.astype(fea.dtype))[None]

    return (tap(x0f, y0f, wx0 * wy0) + tap(x0f + 1.0, y0f, wx1 * wy0)
            + tap(x0f, y0f + 1.0, wx0 * wy1) + tap(x0f + 1.0, y0f + 1.0, wx1 * wy1))


def homo_warping(src_fea, src_proj, ref_proj, depth_values):
    """src_fea [B,C,H,W], src/ref_proj [B,4,4] -> warped volume [B,C,D,H*W]."""
    # TODO(synk): grid_sample-style scattered bilinear gather has no clean
    # Pallas equivalent here; it stays in plain JAX glue.
    B, C, H, W = src_fea.shape
    proj = src_proj @ jnp.linalg.inv(ref_proj)                   # [B, 4, 4]
    rot = proj[:, :3, :3]
    trans = proj[:, :3, 3]                                       # [B, 3]

    yy, xx = jnp.meshgrid(jnp.arange(H, dtype=jnp.float32),
                          jnp.arange(W, dtype=jnp.float32), indexing="ij")
    xyz = jnp.stack([xx.reshape(-1), yy.reshape(-1),
                     jnp.ones((H * W,), jnp.float32)], axis=0)   # [3, HW]
    rot_xyz = jnp.einsum("bij,jn->bin", rot, xyz)                # [B, 3, HW]
    rot_depth_xyz = rot_xyz[:, :, None, :] * depth_values[:, None, :, None]
    proj_xyz = rot_depth_xyz + trans[:, :, None, None]           # [B, 3, D, HW]
    px = proj_xyz[:, 0] / proj_xyz[:, 2]
    py = proj_xyz[:, 1] / proj_xyz[:, 2]
    return jax.vmap(_bilinear_sample_zeros)(src_fea, px, py)     # [B, C, D, HW]


# --------------------------------------------------------------------------
# DepthNet.forward
# --------------------------------------------------------------------------
def depthnet_forward(features, proj_matrices, depth_values, num_depth,
                     cost_reg_weight, cost_reg_bias, prob_volume_init=None):
    proj_list = [proj_matrices[:, i] for i in range(proj_matrices.shape[1])]
    assert len(features) == len(proj_list)
    assert depth_values.shape[1] == num_depth
    ref_feature, src_features = features[0], features[1:]
    ref_proj, src_projs = proj_list[0], proj_list[1:]
    B, C, H, W = ref_feature.shape
    HW = H * W

    ref_proj_new = ref_proj[:, 0].at[:, :3, :4].set(
        ref_proj[:, 1, :3, :3] @ ref_proj[:, 0, :3, :4])

    vols = [jnp.broadcast_to(ref_feature.reshape(B, C, 1, HW),
                             (B, C, num_depth, HW))]
    for src_fea, src_proj in zip(src_features, src_projs):
        src_proj_new = src_proj[:, 0].at[:, :3, :4].set(
            src_proj[:, 1, :3, :3] @ src_proj[:, 0, :3, :4])
        vols.append(homo_warping(src_fea, src_proj_new, ref_proj_new,
                                 depth_values))
    # [V, B, C, D, HW] in bf16 (natural layout; no host-side transpose).
    vols = jnp.stack(vols, axis=0).astype(jnp.bfloat16)

    # TODO(synk): the real CasMVSNet cost_regularization is a caller-supplied
    # 3D U-Net; replaced here by a deterministic 1x1x1 Conv3d(C -> 1).
    waug = _build_depth_weights(depth_values)
    depth, conf = fused_cost_softmax_depth(vols, cost_reg_weight,
                                           cost_reg_bias, waug,
                                           prob_volume_init)
    return {"depth": depth.reshape(B, H, W),
            "photometric_confidence": conf.reshape(B, H, W)}


# --------------------------------------------------------------------------
if __name__ == "__main__":
    key = jax.random.PRNGKey(0)
    B, C, H, W = 2, 8, 16, 16
    D = 8          # num_depth
    V = 3          # num_views

    feat_keys = jax.random.split(key, V)
    features = [jax.random.normal(feat_keys[i], (B, C, H, W), jnp.float32)
                for i in range(V)]

    # projection matrices: [B, V, 2, 4, 4]; index 0 = extrinsics, 1 = intrinsics
    fx = fy = 10.0
    cx = cy = 8.0
    intr = jnp.array([[fx, 0.0, cx, 0.0],
                      [0.0, fy, cy, 0.0],
                      [0.0, 0.0, 1.0, 0.0],
                      [0.0, 0.0, 0.0, 1.0]], jnp.float32)

    def extr(tx, ty):
        e = jnp.eye(4, dtype=jnp.float32)
        return e.at[0, 3].set(tx).at[1, 3].set(ty)

    extrs = jnp.stack([extr(0.0, 0.0), extr(0.25, 0.0), extr(0.0, 0.2)], 0)
    proj_single = jnp.stack([extrs, jnp.broadcast_to(intr, (V, 4, 4))], axis=1)
    proj_matrices = jnp.broadcast_to(proj_single[None], (B, V, 2, 4, 4))

    depth_values = jnp.broadcast_to(
        jnp.linspace(1.0, 4.0, D, dtype=jnp.float32)[None], (B, D))

    # deterministic 1x1x1 Conv3d(C, 1) cost-regularization parameters
    cost_w = (jnp.arange(C, dtype=jnp.float32) - (C - 1) / 2.0) * 0.1
    cost_b = jnp.array([0.05], jnp.float32)

    fwd = jax.jit(functools.partial(depthnet_forward, num_depth=D))
    out = fwd(features, proj_matrices, depth_values,
              cost_reg_weight=cost_w, cost_reg_bias=cost_b)
    jax.block_until_ready(out)

    assert out["depth"].shape == (B, H, W)
    assert out["photometric_confidence"].shape == (B, H, W)
    assert bool(jnp.all(jnp.isfinite(out["depth"])))
    assert bool(jnp.all(jnp.isfinite(out["photometric_confidence"])))
    print("KERNEL_OK")
</pallas_src>

<mosaic_0001>
module attributes {stable_mosaic.version = 11 : i64} {
  func.func @_fused_depth_kernel(%arg0: i32, %arg1: i32, %arg2: memref<8xf32, #tpu.memory_space<smem>>, %arg3: memref<1xf32, #tpu.memory_space<smem>>, %arg4: memref<3x1x8x8x256xbf16, #tpu.memory_space<vmem>>, %arg5: memref<1x10x8xf32, #tpu.memory_space<vmem>>, %arg6: memref<1x1x256xf32, #tpu.memory_space<vmem>>, %arg7: memref<1x1x256xf32, #tpu.memory_space<vmem>>) attributes {dimension_semantics = [#tpu.dimension_semantics<parallel>, #tpu.dimension_semantics<parallel>], iteration_bounds = array<i64: 2, 1>, scalar_prefetch = 0 : i64, scratch_operands = 0 : i64, tpu.core_type = #tpu.core_type<tc>, window_params = [{transform_indices = @transform_0, window_bounds = array<i64: 8>}, {transform_indices = @transform_1, window_bounds = array<i64: 1>}, {transform_indices = @transform_2, window_bounds = array<i64: 3, 1, 8, 8, 256>}, {transform_indices = @transform_3, window_bounds = array<i64: 1, 10, 8>}, {transform_indices = @transform_4, window_bounds = array<i64: 1, 1, 256>}, {transform_indices = @transform_5, window_bounds = array<i64: 1, 1, 256>}]} {
    %c0 = arith.constant 0 : index
    %0 = memref.load %arg3[%c0] : memref<1xf32, #tpu.memory_space<smem>>
    %1 = vector.broadcast %0 : f32 to vector<8x256xf32>
    %cst = arith.constant 0.000000e+00 : f32
    %2 = vector.broadcast %cst : f32 to vector<8x256xf32>
    %cst_0 = arith.constant 0.000000e+00 : f32
    %3 = vector.broadcast %cst_0 : f32 to vector<8x256xf32>
    %c0_1 = arith.constant 0 : index
    %c0_2 = arith.constant 0 : index
    %c0_3 = arith.constant 0 : index
    %c0_4 = arith.constant 0 : index
    %c0_5 = arith.constant 0 : index
    %4 = vector.load %arg4[%c0_1, %c0_2, %c0_3, %c0_4, %c0_5] : memref<3x1x8x8x256xbf16, #tpu.memory_space<vmem>>, vector<1x1x1x8x256xbf16>
    %5 = vector.shape_cast %4 : vector<1x1x1x8x256xbf16> to vector<8x256xbf16>
    %6 = arith.extf %5 : vector<8x256xbf16> to vector<8x256xf32>
    %7 = arith.addf %2, %6 : vector<8x256xf32>
    %8 = arith.mulf %6, %6 : vector<8x256xf32>
    %9 = arith.addf %3, %8 : vector<8x256xf32>
    %c1 = arith.constant 1 : index
    %c0_6 = arith.constant 0 : index
    %c0_7 = arith.constant 0 : index
    %c0_8 = arith.constant 0 : index
    %c0_9 = arith.constant 0 : index
    %10 = vector.load %arg4[%c1, %c0_6, %c0_7, %c0_8, %c0_9] : memref<3x1x8x8x256xbf16, #tpu.memory_space<vmem>>, vector<1x1x1x8x256xbf16>
    %11 = vector.shape_cast %10 : vector<1x1x1x8x256xbf16> to vector<8x256xbf16>
    %12 = arith.extf %11 : vector<8x256xbf16> to vector<8x256xf32>
    %13 = arith.addf %7, %12 : vector<8x256xf32>
    %14 = arith.mulf %12, %12 : vector<8x256xf32>
    %15 = arith.addf %9, %14 : vector<8x256xf32>
    %c2 = arith.constant 2 : index
    %c0_10 = arith.constant 0 : index
    %c0_11 = arith.constant 0 : index
    %c0_12 = arith.constant 0 : index
    %c0_13 = arith.constant 0 : index
    %16 = vector.load %arg4[%c2, %c0_10, %c0_11, %c0_12, %c0_13] : memref<3x1x8x8x256xbf16, #tpu.memory_space<vmem>>, vector<1x1x1x8x256xbf16>
    %17 = vector.shape_cast %16 : vector<1x1x1x8x256xbf16> to vector<8x256xbf16>
    %18 = arith.extf %17 : vector<8x256xbf16> to vector<8x256xf32>
    %19 = arith.addf %13, %18 : vector<8x256xf32>
    %20 = arith.mulf %18, %18 : vector<8x256xf32>
    %21 = arith.addf %15, %20 : vector<8x256xf32>
    %cst_14 = arith.constant 0.333333343 : f32
    %22 = vector.broadcast %cst_14 : f32 to vector<8x256xf32>
    %23 = arith.mulf %21, %22 : vector<8x256xf32>
    %cst_15 = arith.constant 0.333333343 : f32
    %24 = vector.broadcast %cst_15 : f32 to vector<8x256xf32>
    %25 = arith.mulf %19, %24 : vector<8x256xf32>
    %26 = arith.mulf %25, %25 : vector<8x256xf32>
    %27 = arith.subf %23, %26 : vector<8x256xf32>
    %c0_16 = arith.constant 0 : index
    %28 = memref.load %arg2[%c0_16] : memref<8xf32, #tpu.memory_space<smem>>
    %29 = vector.broadcast %28 : f32 to vector<8x256xf32>
    %30 = arith.mulf %27, %29 : vector<8x256xf32>
    %31 = arith.addf %1, %30 : vector<8x256xf32>
    %cst_17 = arith.constant 0.000000e+00 : f32
    %32 = vector.broadcast %cst_17 : f32 to vector<8x256xf32>
    %cst_18 = arith.constant 0.000000e+00 : f32
    %33 = vector.broadcast %cst_18 : f32 to vector<8x256xf32>
    %c0_19 = arith.constant 0 : index
    %c0_20 = arith.constant 0 : index
    %c1_21 = arith.constant 1 : index
    %c0_22 = arith.constant 0 : index
    %c0_23 = arith.constant 0 : index
    %34 = vector.load %arg4[%c0_19, %c0_20, %c1_21, %c0_22, %c0_23] : memref<3x1x8x8x256xbf16, #tpu.memory_space<vmem>>, vector<1x1x1x8x256xbf16>
    %35 = vector.shape_cast %34 : vector<1x1x1x8x256xbf16> to vector<8x256xbf16>
    %36 = arith.extf %35 : vector<8x256xbf16> to vector<8x256xf32>
    %37 = arith.addf %32, %36 : vector<8x256xf32>
    %38 = arith.mulf %36, %36 : vector<8x256xf32>
    %39 = arith.addf %33, %38 : vector<8x256xf32>
    %c1_24 = arith.constant 1 : index
    %c0_25 = arith.constant 0 : index
    %c1_26 = arith.constant 1 : index
    %c0_27 = arith.constant 0 : index
    %c0_28 = arith.constant 0 : index
    %40 = vector.load %arg4[%c1_24, %c0_25, %c1_26, %c0_27, %c0_28] : memref<3x1x8x8x256xbf16, #tpu.memory_space<vmem>>, vector<1x1x1x8x256xbf16>
    %41 = vector.shape_cast %40 : vector<1x1x1x8x256xbf16> to vector<8x256xbf16>
    %42 = arith.extf %41 : vector<8x256xbf16> to vector<8x256xf32>
    %43 = arith.addf %37, %42 : vector<8x256xf32>
    %44 = arith.mulf %42, %42 : vector<8x256xf32>
    %45 = arith.addf %39, %44 : vector<8x256xf32>
    %c2_29 = arith.constant 2 : index
    %c0_30 = arith.constant 0 : index
    %c1_31 = arith.constant 1 : index
    %c0_32 = arith.constant 0 : index
    %c0_33 = arith.constant 0 : index
    %46 = vector.load %arg4[%c2_29, %c0_30, %c1_31, %c0_32, %c0_33] : memref<3x1x8x8x256xbf16, #tpu.memory_space<vmem>>, vector<1x1x1x8x256xbf16>
    %47 = vector.shape_cast %46 : vector<1x1x1x8x256xbf16> to vector<8x256xbf16>
    %48 = arith.extf %47 : vector<8x256xbf16> to vector<8x256xf32>
    %49 = arith.addf %43, %48 : vector<8x256xf32>
    %50 = arith.mulf %48, %48 : vector<8x256xf32>
    %51 = arith.addf %45, %50 : vector<8x256xf32>
    %cst_34 = arith.constant 0.333333343 : f32
    %52 = vector.broadcast %cst_34 : f32 to vector<8x256xf32>
    %53 = arith.mulf %51, %52 : vector<8x256xf32>
    %cst_35 = arith.constant 0.333333343 : f32
    %54 = vector.broadcast %cst_35 : f32 to vector<8x256xf32>
    %55 = arith.mulf %49, %54 : vector<8x256xf32>
    %56 = arith.mulf %55, %55 : vector<8x256xf32>
    %57 = arith.subf %53, %56 : vector<8x256xf32>
    %c1_36 = arith.constant 1 : index
    %58 = memref.load %arg2[%c1_36] : memref<8xf32, #tpu.memory_space<smem>>
    %59 = vector.broadcast %58 : f32 to vector<8x256xf32>
    %60 = arith.mulf %57, %59 : vector<8x256xf32>
    %61 = arith.addf %31, %60 : vector<8x256xf32>
    %cst_37 = arith.constant 0.000000e+00 : f32
    %62 = vector.broadcast %cst_37 : f32 to vector<8x256xf32>
    %cst_38 = arith.constant 0.000000e+00 : f32
    %63 = vector.broadcast %cst_38 : f32 to vector<8x256xf32>
    %c0_39 = arith.constant 0 : index
    %c0_40 = arith.constant 0 : index
    %c2_41 = arith.constant 2 : index
    %c0_42 = arith.constant 0 : index
    %c0_43 = arith.constant 0 : index
    %64 = vector.load %arg4[%c0_39, %c0_40, %c2_41, %c0_42, %c0_43] : memref<3x1x8x8x256xbf16, #tpu.memory_space<vmem>>, vector<1x1x1x8x256xbf16>
    %65 = vector.shape_cast %64 : vector<1x1x1x8x256xbf16> to vector<8x256xbf16>
    %66 = arith.extf %65 : vector<8x256xbf16> to vector<8x256xf32>
    %67 = arith.addf %62, %66 : vector<8x256xf32>
    %68 = arith.mulf %66, %66 : vector<8x256xf32>
    %69 = arith.addf %63, %68 : vector<8x256xf32>
    %c1_44 = arith.constant 1 : index
    %c0_45 = arith.constant 0 : index
    %c2_46 = arith.constant 2 : index
    %c0_47 = arith.constant 0 : index
    %c0_48 = arith.constant 0 : index
    %70 = vector.load %arg4[%c1_44, %c0_45, %c2_46, %c0_47, %c0_48] : memref<3x1x8x8x256xbf16, #tpu.memory_space<vmem>>, vector<1x1x1x8x256xbf16>
    %71 = vector.shape_cast %70 : vector<1x1x1x8x256xbf16> to vector<8x256xbf16>
    %72 = arith.extf %71 : vector<8x256xbf16> to vector<8x256xf32>
    %73 = arith.addf %67, %72 : vector<8x256xf32>
    %74 = arith.mulf %72, %72 : vector<8x256xf32>
    %75 = arith.addf %69, %74 : vector<8x256xf32>
    %c2_49 = arith.constant 2 : index
    %c0_50 = arith.constant 0 : index
    %c2_51 = arith.constant 2 : index
    %c0_52 = arith.constant 0 : index
    %c0_53 = arith.constant 0 : index
    %76 = vector.load %arg4[%c2_49, %c0_50, %c2_51, %c0_52, %c0_53] : memref<3x1x8x8x256xbf16, #tpu.memory_space<vmem>>, vector<1x1x1x8x256xbf16>
    %77 = vector.shape_cast %76 : vector<1x1x1x8x256xbf16> to vector<8x256xbf16>
    %78 = arith.extf %77 : vector<8x256xbf16> to vector<8x256xf32>
    %79 = arith.addf %73, %78 : vector<8x256xf32>
    %80 = arith.mulf %78, %78 : vector<8x256xf32>
    %81 = arith.addf %75, %80 : vector<8x256xf32>
    %cst_54 = arith.constant 0.333333343 : f32
    %82 = vector.broadcast %cst_54 : f32 to vector<8x256xf32>
    %83 = arith.mulf %81, %82 : vector<8x256xf32>
    %cst_55 = arith.constant 0.333333343 : f32
    %84 = vector.broadcast %cst_55 : f32 to vector<8x256xf32>
    %85 = arith.mulf %79, %84 : vector<8x256xf32>
    %86 = arith.mulf %85, %85 : vector<8x256xf32>
    %87 = arith.subf %83, %86 : vector<8x256xf32>
    %c2_56 = arith.constant 2 : index
    %88 = memref.load %arg2[%c2_56] : memref<8xf32, #tpu.memory_space<smem>>
    %89 = vector.broadcast %88 : f32 to vector<8x256xf32>
    %90 = arith.mulf %87, %89 : vector<8x256xf32>
    %91 = arith.addf %61, %90 : vector<8x256xf32>
    %cst_57 = arith.constant 0.000000e+00 : f32
    %92 = vector.broadcast %cst_57 : f32 to vector<8x256xf32>
    %cst_58 = arith.constant 0.000000e+00 : f32
    %93 = vector.broadcast %cst_58 : f32 to vector<8x256xf32>
    %c0_59 = arith.constant 0 : index
    %c0_60 = arith.constant 0 : index
    %c3 = arith.constant 3 : index
    %c0_61 = arith.constant 0 : index
    %c0_62 = arith.constant 0 : index
    %94 = vector.load %arg4[%c0_59, %c0_60, %c3, %c0_61, %c0_62] : memref<3x1x8x8x256xbf16, #tpu.memory_space<vmem>>, vector<1x1x1x8x256xbf16>
    %95 = vector.shape_cast %94 : vector<1x1x1x8x256xbf16> to vector<8x256xbf16>
    %96 = arith.extf %95 : vector<8x256xbf16> to vector<8x256xf32>
    %97 = arith.addf %92, %96 : vector<8x256xf32>
    %98 = arith.mulf %96, %96 : vector<8x256xf32>
    %99 = arith.addf %93, %98 : vector<8x256xf32>
    %c1_63 = arith.constant 1 : index
    %c0_64 = arith.constant 0 : index
    %c3_65 = arith.constant 3 : index
    %c0_66 = arith.constant 0 : index
    %c0_67 = arith.constant 0 : index
    %100 = vector.load %arg4[%c1_63, %c0_64, %c3_65, %c0_66, %c0_67] : memref<3x1x8x8x256xbf16, #tpu.memory_space<vmem>>, vector<1x1x1x8x256xbf16>
    %101 = vector.shape_cast %100 : vector<1x1x1x8x256xbf16> to vector<8x256xbf16>
    %102 = arith.extf %101 : vector<8x256xbf16> to vector<8x256xf32>
    %103 = arith.addf %97, %102 : vector<8x256xf32>
    %104 = arith.mulf %102, %102 : vector<8x256xf32>
    %105 = arith.addf %99, %104 : vector<8x256xf32>
    %c2_68 = arith.constant 2 : index
    %c0_69 = arith.constant 0 : index
    %c3_70 = arith.constant 3 : index
    %c0_71 = arith.constant 0 : index
    %c0_72 = arith.constant 0 : index
    %106 = vector.load %arg4[%c2_68, %c0_69, %c3_70, %c0_71, %c0_72] : memref<3x1x8x8x256xbf16, #tpu.memory_space<vmem>>, vector<1x1x1x8x256xbf16>
    %107 = vector.shape_cast %106 : vector<1x1x1x8x256xbf16> to vector<8x256xbf16>
    %108 = arith.extf %107 : vector<8x256xbf16> to vector<8x256xf32>
    %109 = arith.addf %103, %108 : vector<8x256xf32>
    %110 = arith.mulf %108, %108 : vector<8x256xf32>
    %111 = arith.addf %105, %110 : vector<8x256xf32>
    %cst_73 = arith.constant 0.333333343 : f32
    %112 = vector.broadcast %cst_73 : f32 to vector<8x256xf32>
    %113 = arith.mulf %111, %112 : vector<8x256xf32>
    %cst_74 = arith.constant 0.333333343 : f32
    %114 = vector.broadcast %cst_74 : f32 to vector<8x256xf32>
    %115 = arith.mulf %109, %114 : vector<8x256xf32>
    %116 = arith.mulf %115, %115 : vector<8x256xf32>
    %117 = arith.subf %113, %116 : vector<8x256xf32>
    %c3_75 = arith.constant 3 : index
    %118 = memref.load %arg2[%c3_75] : memref<8xf32, #tpu.memory_space<smem>>
    %119 = vector.broadcast %118 : f32 to vector<8x256xf32>
    %120 = arith.mulf %117, %119 : vector<8x256xf32>
    %121 = arith.addf %91, %120 : vector<8x256xf32>
    %cst_76 = arith.constant 0.000000e+00 : f32
    %122 = vector.broadcast %cst_76 : f32 to vector<8x256xf32>
    %cst_77 = arith.constant 0.000000e+00 : f32
    %123 = vector.broadcast %cst_77 : f32 to vector<8x256xf32>
    %c0_78 = arith.constant 0 : index
    %c0_79 = arith.constant 0 : index
    %c4 = arith.constant 4 : index
    %c0_80 = arith.constant 0 : index
    %c0_81 = arith.constant 0 : index
    %124 = vector.load %arg4[%c0_78, %c0_79, %c4, %c0_80, %c0_81] : memref<3x1x8x8x256xbf16, #tpu.memory_space<vmem>>, vector<1x1x1x8x256xbf16>
    %125 = vector.shape_cast %124 : vector<1x1x1x8x256xbf16> to vector<8x256xbf16>
    %126 = arith.extf %125 : vector<8x256xbf16> to vector<8x256xf32>
    %127 = arith.addf %122, %126 : vector<8x256xf32>
    %128 = arith.mulf %126, %126 : vector<8x256xf32>
    %129 = arith.addf %123, %128 : vector<8x256xf32>
    %c1_82 = arith.constant 1 : index
    %c0_83 = arith.constant 0 : index
    %c4_84 = arith.constant 4 : index
    %c0_85 = arith.constant 0 : index
    %c0_86 = arith.constant 0 : index
    %130 = vector.load %arg4[%c1_82, %c0_83, %c4_84, %c0_85, %c0_86] : memref<3x1x8x8x256xbf16, #tpu.memory_space<vmem>>, vector<1x1x1x8x256xbf16>
    %131 = vector.shape_cast %130 : vector<1x1x1x8x256xbf16> to vector<8x256xbf16>
    %132 = arith.extf %131 : vector<8x256xbf16> to vector<8x256xf32>
    %133 = arith.addf %127, %132 : vector<8x256xf32>
    %134 = arith.mulf %132, %132 : vector<8x256xf32>
    %135 = arith.addf %129, %134 : vector<8x256xf32>
    %c2_87 = arith.constant 2 : index
    %c0_88 = arith.constant 0 : index
    %c4_89 = arith.constant 4 : index
    %c0_90 = arith.constant 0 : index
    %c0_91 = arith.constant 0 : index
    %136 = vector.load %arg4[%c2_87, %c0_88, %c4_89, %c0_90, %c0_91] : memref<3x1x8x8x256xbf16, #tpu.memory_space<vmem>>, vector<1x1x1x8x256xbf16>
    %137 = vector.shape_cast %136 : vector<1x1x1x8x256xbf16> to vector<8x256xbf16>
    %138 = arith.extf %137 : vector<8x256xbf16> to vector<8x256xf32>
    %139 = arith.addf %133, %138 : vector<8x256xf32>
    %140 = arith.mulf %138, %138 : vector<8x256xf32>
    %141 = arith.addf %135, %140 : vector<8x256xf32>
    %cst_92 = arith.constant 0.333333343 : f32
    %142 = vector.broadcast %cst_92 : f32 to vector<8x256xf32>
    %143 = arith.mulf %141, %142 : vector<8x256xf32>
    %cst_93 = arith.constant 0.333333343 : f32
    %144 = vector.broadcast %cst_93 : f32 to vector<8x256xf32>
    %145 = arith.mulf %139, %144 : vector<8x256xf32>
    %146 = arith.mulf %145, %145 : vector<8x256xf32>
    %147 = arith.subf %143, %146 : vector<8x256xf32>
    %c4_94 = arith.constant 4 : index
    %148 = memref.load %arg2[%c4_94] : memref<8xf32, #tpu.memory_space<smem>>
    %149 = vector.broadcast %148 : f32 to vector<8x256xf32>
    %150 = arith.mulf %147, %149 : vector<8x256xf32>
    %151 = arith.addf %121, %150 : vector<8x256xf32>
    %cst_95 = arith.constant 0.000000e+00 : f32
    %152 = vector.broadcast %cst_95 : f32 to vector<8x256xf32>
    %cst_96 = arith.constant 0.000000e+00 : f32
    %153 = vector.broadcast %cst_96 : f32 to vector<8x256xf32>
    %c0_97 = arith.constant 0 : index
    %c0_98 = arith.constant 0 : index
    %c5 = arith.constant 5 : index
    %c0_99 = arith.constant 0 : index
    %c0_100 = arith.constant 0 : index
    %154 = vector.load %arg4[%c0_97, %c0_98, %c5, %c0_99, %c0_100] : memref<3x1x8x8x256xbf16, #tpu.memory_space<vmem>>, vector<1x1x1x8x256xbf16>
    %155 = vector.shape_cast %154 : vector<1x1x1x8x256xbf16> to vector<8x256xbf16>
    %156 = arith.extf %155 : vector<8x256xbf16> to vector<8x256xf32>
    %157 = arith.addf %152, %156 : vector<8x256xf32>
    %158 = arith.mulf %156, %156 : vector<8x256xf32>
    %159 = arith.addf %153, %158 : vector<8x256xf32>
    %c1_101 = arith.constant 1 : index
    %c0_102 = arith.constant 0 : index
    %c5_103 = arith.constant 5 : index
    %c0_104 = arith.constant 0 : index
    %c0_105 = arith.constant 0 : index
    %160 = vector.load %arg4[%c1_101, %c0_102, %c5_103, %c0_104, %c0_105] : memref<3x1x8x8x256xbf16, #tpu.memory_space<vmem>>, vector<1x1x1x8x256xbf16>
    %161 = vector.shape_cast %160 : vector<1x1x1x8x256xbf16> to vector<8x256xbf16>
    %162 = arith.extf %161 : vector<8x256xbf16> to vector<8x256xf32>
    %163 = arith.addf %157, %162 : vector<8x256xf32>
    %164 = arith.mulf %162, %162 : vector<8x256xf32>
    %165 = arith.addf %159, %164 : vector<8x256xf32>
    %c2_106 = arith.constant 2 : index
    %c0_107 = arith.constant 0 : index
    %c5_108 = arith.constant 5 : index
    %c0_109 = arith.constant 0 : index
    %c0_110 = arith.constant 0 : index
    %166 = vector.load %arg4[%c2_106, %c0_107, %c5_108, %c0_109, %c0_110] : memref<3x1x8x8x256xbf16, #tpu.memory_space<vmem>>, vector<1x1x1x8x256xbf16>
    %167 = vector.shape_cast %166 : vector<1x1x1x8x256xbf16> to vector<8x256xbf16>
    %168 = arith.extf %167 : vector<8x256xbf16> to vector<8x256xf32>
    %169 = arith.addf %163, %168 : vector<8x256xf32>
    %170 = arith.mulf %168, %168 : vector<8x256xf32>
    %171 = arith.addf %165, %170 : vector<8x256xf32>
    %cst_111 = arith.constant 0.333333343 : f32
    %172 = vector.broadcast %cst_111 : f32 to vector<8x256xf32>
    %173 = arith.mulf %171, %172 : vector<8x256xf32>
    %cst_112 = arith.constant 0.333333343 : f32
    %174 = vector.broadcast %cst_112 : f32 to vector<8x256xf32>
    %175 = arith.mulf %169, %174 : vector<8x256xf32>
    %176 = arith.mulf %175, %175 : vector<8x256xf32>
    %177 = arith.subf %173, %176 : vector<8x256xf32>
    %c5_113 = arith.constant 5 : index
    %178 = memref.load %arg2[%c5_113] : memref<8xf32, #tpu.memory_space<smem>>
    %179 = vector.broadcast %178 : f32 to vector<8x256xf32>
    %180 = arith.mulf %177, %179 : vector<8x256xf32>
    %181 = arith.addf %151, %180 : vector<8x256xf32>
    %cst_114 = arith.constant 0.000000e+00 : f32
    %182 = vector.broadcast %cst_114 : f32 to vector<8x256xf32>
    %cst_115 = arith.constant 0.000000e+00 : f32
    %183 = vector.broadcast %cst_115 : f32 to vector<8x256xf32>
    %c0_116 = arith.constant 0 : index
    %c0_117 = arith.constant 0 : index
    %c6 = arith.constant 6 : index
    %c0_118 = arith.constant 0 : index
    %c0_119 = arith.constant 0 : index
    %184 = vector.load %arg4[%c0_116, %c0_117, %c6, %c0_118, %c0_119] : memref<3x1x8x8x256xbf16, #tpu.memory_space<vmem>>, vector<1x1x1x8x256xbf16>
    %185 = vector.shape_cast %184 : vector<1x1x1x8x256xbf16> to vector<8x256xbf16>
    %186 = arith.extf %185 : vector<8x256xbf16> to vector<8x256xf32>
    %187 = arith.addf %182, %186 : vector<8x256xf32>
    %188 = arith.mulf %186, %186 : vector<8x256xf32>
    %189 = arith.addf %183, %188 : vector<8x256xf32>
    %c1_120 = arith.constant 1 : index
    %c0_121 = arith.constant 0 : index
    %c6_122 = arith.constant 6 : index
    %c0_123 = arith.constant 0 : index
    %c0_124 = arith.constant 0 : index
    %190 = vector.load %arg4[%c1_120, %c0_121, %c6_122, %c0_123, %c0_124] : memref<3x1x8x8x256xbf16, #tpu.memory_space<vmem>>, vector<1x1x1x8x256xbf16>
    %191 = vector.shape_cast %190 : vector<1x1x1x8x256xbf16> to vector<8x256xbf16>
    %192 = arith.extf %191 : vector<8x256xbf16> to vector<8x256xf32>
    %193 = arith.addf %187, %192 : vector<8x256xf32>
    %194 = arith.mulf %192, %192 : vector<8x256xf32>
    %195 = arith.addf %189, %194 : vector<8x256xf32>
    %c2_125 = arith.constant 2 : index
    %c0_126 = arith.constant 0 : index
    %c6_127 = arith.constant 6 : index
    %c0_128 = arith.constant 0 : index
    %c0_129 = arith.constant 0 : index
    %196 = vector.load %arg4[%c2_125, %c0_126, %c6_127, %c0_128, %c0_129] : memref<3x1x8x8x256xbf16, #tpu.memory_space<vmem>>, vector<1x1x1x8x256xbf16>
    %197 = vector.shape_cast %196 : vector<1x1x1x8x256xbf16> to vector<8x256xbf16>
    %198 = arith.extf %197 : vector<8x256xbf16> to vector<8x256xf32>
    %199 = arith.addf %193, %198 : vector<8x256xf32>
    %200 = arith.mulf %198, %198 : vector<8x256xf32>
    %201 = arith.addf %195, %200 : vector<8x256xf32>
    %cst_130 = arith.constant 0.333333343 : f32
    %202 = vector.broadcast %cst_130 : f32 to vector<8x256xf32>
    %203 = arith.mulf %201, %202 : vector<8x256xf32>
    %cst_131 = arith.constant 0.333333343 : f32
    %204 = vector.broadcast %cst_131 : f32 to vector<8x256xf32>
    %205 = arith.mulf %199, %204 : vector<8x256xf32>
    %206 = arith.mulf %205, %205 : vector<8x256xf32>
    %207 = arith.subf %203, %206 : vector<8x256xf32>
    %c6_132 = arith.constant 6 : index
    %208 = memref.load %arg2[%c6_132] : memref<8xf32, #tpu.memory_space<smem>>
    %209 = vector.broadcast %208 : f32 to vector<8x256xf32>
    %210 = arith.mulf %207, %209 : vector<8x256xf32>
    %211 = arith.addf %181, %210 : vector<8x256xf32>
    %cst_133 = arith.constant 0.000000e+00 : f32
    %212 = vector.broadcast %cst_133 : f32 to vector<8x256xf32>
    %cst_134 = arith.constant 0.000000e+00 : f32
    %213 = vector.broadcast %cst_134 : f32 to vector<8x256xf32>
    %c0_135 = arith.constant 0 : index
    %c0_136 = arith.constant 0 : index
    %c7 = arith.constant 7 : index
    %c0_137 = arith.constant 0 : index
    %c0_138 = arith.constant 0 : index
    %214 = vector.load %arg4[%c0_135, %c0_136, %c7, %c0_137, %c0_138] : memref<3x1x8x8x256xbf16, #tpu.memory_space<vmem>>, vector<1x1x1x8x256xbf16>
    %215 = vector.shape_cast %214 : vector<1x1x1x8x256xbf16> to vector<8x256xbf16>
    %216 = arith.extf %215 : vector<8x256xbf16> to vector<8x256xf32>
    %217 = arith.addf %212, %216 : vector<8x256xf32>
    %218 = arith.mulf %216, %216 : vector<8x256xf32>
    %219 = arith.addf %213, %218 : vector<8x256xf32>
    %c1_139 = arith.constant 1 : index
    %c0_140 = arith.constant 0 : index
    %c7_141 = arith.constant 7 : index
    %c0_142 = arith.constant 0 : index
    %c0_143 = arith.constant 0 : index
    %220 = vector.load %arg4[%c1_139, %c0_140, %c7_141, %c0_142, %c0_143] : memref<3x1x8x8x256xbf16, #tpu.memory_space<vmem>>, vector<1x1x1x8x256xbf16>
    %221 = vector.shape_cast %220 : vector<1x1x1x8x256xbf16> to vector<8x256xbf16>
    %222 = arith.extf %221 : vector<8x256xbf16> to vector<8x256xf32>
    %223 = arith.addf %217, %222 : vector<8x256xf32>
    %224 = arith.mulf %222, %222 : vector<8x256xf32>
    %225 = arith.addf %219, %224 : vector<8x256xf32>
    %c2_144 = arith.constant 2 : index
    %c0_145 = arith.constant 0 : index
    %c7_146 = arith.constant 7 : index
    %c0_147 = arith.constant 0 : index
    %c0_148 = arith.constant 0 : index
    %226 = vector.load %arg4[%c2_144, %c0_145, %c7_146, %c0_147, %c0_148] : memref<3x1x8x8x256xbf16, #tpu.memory_space<vmem>>, vector<1x1x1x8x256xbf16>
    %227 = vector.shape_cast %226 : vector<1x1x1x8x256xbf16> to vector<8x256xbf16>
    %228 = arith.extf %227 : vector<8x256xbf16> to vector<8x256xf32>
    %229 = arith.addf %223, %228 : vector<8x256xf32>
    %230 = arith.mulf %228, %228 : vector<8x256xf32>
    %231 = arith.addf %225, %230 : vector<8x256xf32>
    %cst_149 = arith.constant 0.333333343 : f32
    %232 = vector.broadcast %cst_149 : f32 to vector<8x256xf32>
    %233 = arith.mulf %231, %232 : vector<8x256xf32>
    %cst_150 = arith.constant 0.333333343 : f32
    %234 = vector.broadcast %cst_150 : f32 to vector<8x256xf32>
    %235 = arith.mulf %229, %234 : vector<8x256xf32>
    %236 = arith.mulf %235, %235 : vector<8x256xf32>
    %237 = arith.subf %233, %236 : vector<8x256xf32>
    %c7_151 = arith.constant 7 : index
    %238 = memref.load %arg2[%c7_151] : memref<8xf32, #tpu.memory_space<smem>>
    %239 = vector.broadcast %238 : f32 to vector<8x256xf32>
    %240 = arith.mulf %237, %239 : vector<8x256xf32>
    %241 = arith.addf %211, %240 : vector<8x256xf32>
    %cst_152 = arith.constant dense<0xFF800000> : vector<256xf32>
    %242 = vector.multi_reduction <maximumf>, %241, %cst_152 [0] : vector<8x256xf32> to vector<256xf32>
    %243 = vector.shape_cast %242 : vector<256xf32> to vector<1x256xf32>
    %244 = vector.broadcast %243 : vector<1x256xf32> to vector<8x256xf32>
    %245 = arith.subf %241, %244 : vector<8x256xf32>
    %246 = math.exp %245 : vector<8x256xf32>
    %cst_153 = arith.constant dense<0.000000e+00> : vector<256xf32>
    %247 = vector.multi_reduction <add>, %246, %cst_153 [0] : vector<8x256xf32> to vector<256xf32>
    %248 = vector.shape_cast %247 : vector<256xf32> to vector<1x256xf32>
    %249 = tpu.reciprocal %248 {approx = true} : vector<1x256xf32> -> vector<1x256xf32>
    %250 = vector.broadcast %249 : vector<1x256xf32> to vector<8x256xf32>
    %251 = arith.mulf %246, %250 : vector<8x256xf32>
    %c0_154 = arith.constant 0 : index
    %c0_155 = arith.constant 0 : index
    %c0_156 = arith.constant 0 : index
    %252 = vector.load %arg5[%c0_154, %c0_155, %c0_156] : memref<1x10x8xf32, #tpu.memory_space<vmem>>, vector<1x10x8xf32>
    %253 = vector.shape_cast %252 : vector<1x10x8xf32> to vector<10x8xf32>
    %cst_157 = arith.constant dense<0.000000e+00> : vector<10x256xf32>
    %254 = tpu.matmul %253, %251, %cst_157 {dimension_numbers = #tpu.dot_dimension_numbers<[1], [0], [0], [1], [0, 0, 1, 1], [], []>} : vector<10x8xf32>, vector<8x256xf32>, vector<10x256xf32> -> vector<10x256xf32>
    %255 = vector.extract_strided_slice %254 {offsets = [0, 0], sizes = [8, 256], strides = [1, 1]} : vector<10x256xf32> to vector<8x256xf32>
    %256 = vector.extract_strided_slice %254 {offsets = [8, 0], sizes = [1, 256], strides = [1, 1]} : vector<10x256xf32> to vector<1x256xf32>
    %257 = vector.extract_strided_slice %254 {offsets = [9, 0], sizes = [1, 256], strides = [1, 1]} : vector<10x256xf32> to vector<1x256xf32>
    %258 = arith.fptosi %257 : vector<1x256xf32> to vector<1x256xi32>
    %c0_i32 = arith.constant 0 : i32
    %c7_i32 = arith.constant 7 : i32
    %259 = vector.broadcast %c0_i32 : i32 to vector<1x256xi32>
    %260 = arith.maxsi %259, %258 : vector<1x256xi32>
    %261 = vector.broadcast %c7_i32 : i32 to vector<1x256xi32>
    %262 = arith.minsi %261, %260 : vector<1x256xi32>
    %263 = tpu.iota {dimensions = array<i32: 0>} : vector<8x256xi32>
    %264 = vector.broadcast %262 : vector<1x256xi32> to vector<8x256xi32>
    %265 = arith.cmpi eq, %263, %264 : vector<8x256xi32>
    %266 = arith.extui %265 : vector<8x256xi1> to vector<8x256xi32>
    %267 = arith.sitofp %266 : vector<8x256xi32> to vector<8x256xf32>
    %268 = arith.mulf %255, %267 : vector<8x256xf32>
    %cst_158 = arith.constant dense<0.000000e+00> : vector<256xf32>
    %269 = vector.multi_reduction <add>, %268, %cst_158 [0] : vector<8x256xf32> to vector<256xf32>
    %270 = vector.shape_cast %269 : vector<256xf32> to vector<1x256xf32>
    %271 = vector.shape_cast %256 : vector<1x256xf32> to vector<1x1x256xf32>
    %c0_159 = arith.constant 0 : index
    %c0_160 = arith.constant 0 : index
    %c0_161 = arith.constant 0 : index
    %272 = vector.load %arg6[%c0_159, %c0_160, %c0_161] : memref<1x1x256xf32, #tpu.memory_space<vmem>>, vector<1x1x256xf32>
    tpu.vector_store %arg6[%c0_159, %c0_160, %c0_161], %271 {strides = array<i32>} : memref<1x1x256xf32, #tpu.memory_space<vmem>>, vector<1x1x256xf32>,
    %273 = vector.shape_cast %270 : vector<1x256xf32> to vector<1x1x256xf32>
    %c0_162 = arith.constant 0 : index
    %c0_163 = arith.constant 0 : index
    %c0_164 = arith.constant 0 : index
    %274 = vector.load %arg7[%c0_162, %c0_163, %c0_164] : memref<1x1x256xf32, #tpu.memory_space<vmem>>, vector<1x1x256xf32>
    tpu.vector_store %arg7[%c0_162, %c0_163, %c0_164], %273 {strides = array<i32>} : memref<1x1x256xf32, #tpu.memory_space<vmem>>, vector<1x1x256xf32>,
    return
  }
  func.func @transform_0(%arg0: i32, %arg1: i32) -> i32 {
    %c0_i32 = arith.constant 0 : i32
    %c0_i32_0 = arith.constant 0 : i32
    return %c0_i32 : i32
  }
  func.func @transform_1(%arg0: i32, %arg1: i32) -> i32 {
    %c0_i32 = arith.constant 0 : i32
    %c0_i32_0 = arith.constant 0 : i32
    return %c0_i32 : i32
  }
  func.func @transform_2(%arg0: i32, %arg1: i32) -> (i32, i32, i32, i32, i32) {
    %c0_i32 = arith.constant 0 : i32
    %c0_i32_0 = arith.constant 0 : i32
    %c0_i32_1 = arith.constant 0 : i32
    %c0_i32_2 = arith.constant 0 : i32
    return %c0_i32, %arg0, %c0_i32_0, %c0_i32_1, %arg1 : i32, i32, i32, i32, i32
  }
  func.func @transform_3(%arg0: i32, %arg1: i32) -> (i32, i32, i32) {
    %c0_i32 = arith.constant 0 : i32
    %c0_i32_0 = arith.constant 0 : i32
    %c0_i32_1 = arith.constant 0 : i32
    return %arg0, %c0_i32, %c0_i32_0 : i32, i32, i32
  }
  func.func @transform_4(%arg0: i32, %arg1: i32) -> (i32, i32, i32) {
    %c0_i32 = arith.constant 0 : i32
    %c0_i32_0 = arith.constant 0 : i32
    return %arg0, %c0_i32, %arg1 : i32, i32, i32
  }
  func.func @transform_5(%arg0: i32, %arg1: i32) -> (i32, i32, i32) {
    %c0_i32 = arith.constant 0 : i32
    %c0_i32_0 = arith.constant 0 : i32
    return %arg0, %c0_i32, %arg1 : i32, i32, i32
  }
}

</mosaic_0001>

<bundles_post_ra>
// kernel: custom-call.31
= control target key start
LH: loop header
LB: loop body
LE: loop exit
PB: predicated region body
PF: predicated region fallthrough
CT: control target
= control target key end

     0   :  { %5 = vsyncpa [#allocation6], 0  ;;  %s911_s0 = inlined_call_operand.vmem [shape: f32[2,4,4], index: 0, kind: input, shape index: {}]   ;;  %s912_s1 = inlined_call_operand.vmem [shape: f32[2,4,4], index: 1, kind: output, shape index: {0}]   ;;  %s913_s2 = inlined_call_operand.hbm [shape: s32[2,4], index: 2, kind: output, shape index: {1}]   ;;  %s914_s3 = inlined_call_operand.vmem [shape: s32[2,4], index: 3, kind: output, shape index: {2}]  }
   0x1   :  { %7 = vsyncpa [#allocation6 + $0x1], 0  ;;  %s735_s12 = smov 0   ;;  %s737_s13 = smov 0  }
   0x2   :  { %s739_s14 = smov 0   ;;  %s741_s15 = smov 0  }
   0x3 LB: > { %s756_s16 = sadd.s32 4294967295, %s708_s15   ;;  %s571_s17 = sadd.s32 4294967294, %s708_s15   ;;  %s708_s15 = sphi %s741_s15, %s920_s15   ;;  %s704_s14 = sphi %s739_s14, %s919_s14   ;;  %s700_s13 = sphi %s737_s13, %s918_s13   ;;  %s696_s12 = sphi %s735_s12, %s917_s12  }
   0x4   : > { %s760_s18 = sadd.s32 1, %s708_s15   ;;  %s17_s19 = sshrl.u32 %s708_s15, 3 }
   0x5   : > { %s18_s20 = sshrl.u32 %s760_s18, 3  ;;  %s22_s21 = sadd.s32 1, %s704_s14 }
   0x6   : > { %s19_s22 = ssub.s32 %s17_s19, %s18_s20  ;;  %p32_p0 = scmp.ne.s32.totalorder %s704_s14, %s700_s13 }
   0x7   : > { %p20_p1 = scmp.eq.s32.totalorder %s19_s22, 0  ;;  %p33_p2 = scmp.eq.s32.totalorder %s756_s16, 1 }
   0x8   : > { %p38_p3 = scmp.ne.s32.totalorder %s700_s13, %s696_s12  ;;  %p39_p4 = scmp.eq.s32.totalorder %s571_s17, 1 }
   0x9   : > { %s771_s23 = scalar_select %p20_p1, %s704_s14, %s22_s21  }
   0xa   : > { %p773_p5 = por %p33_p2, %p32_p0  ;;  %p777_p6 = por %p39_p4, %p38_p3 }
   0xb   : > { %p573_p7 = scmp.ge.s32.totalorder %s708_s15, 2 }
   0xc   : > { %s85_s26 = sand.u32 (!%p573_p7), 1, %s708_s15   ;;  %s575_s27 = sshll.u32 (!%p573_p7), %s708_s15, 2 }
   0xd   : > { %83 = sbr.rel (%p573_p7) target bundleno = 20 (0x14), region = 16  ;;  %s574_s28 = sshll.u32 (!%p573_p7), %s85_s26, 2 }
   0xe   : > { %s89_s4 = scalar_lea.vmem (!%p573_p7), %s911_s0, %s575_s27  ;;  %s87_s5 = scalar_lea.vmem (!%p573_p7), [#allocation1], %s574_s28 }
  0x12   : > { %v106_v0 = vld [vmem:[%s89_s4] sm:$0xf] }
  0x13   : > { %107 = vst [vmem:[%s87_s5] sm:$0xf] %v106_v0 }
  0x14 PF: > { %p576_p8 = scmp.ge.s32.totalorder %s708_s15, 1  ;;  %p124_p9 = scmp.lt.s32.totalorder %s708_s15, 3 }
  0x16   : > { %p125_p10 = pnand %p576_p8, %p124_p9 }
  0x18   : > { %128 = sbr.rel (%p125_p10) target bundleno = 484 (0x1e4), region = 50 }
  0x1d   : > { %s135_s6 = sand.u32 1, %s756_s16   ;;  %s146_s7 = sand.u32 1, %s700_s13   ;;  %v168_v1 = vlaneseq  ;;  %v714_v4 = vmov 0  }
  0x1e   : > { %s793_s8 = sshll.u32 %s135_s6, 2  ;;  %s797_s9 = sshll.u32 %s146_s7, 1 }
  0x1f   : > { %v800_v2 = vshrl.u32 %v168_v1, 7  ;;  %s137_s10 = scalar_lea.vmem [#allocation1], %s793_s8  ;;  %s163_s11 = sand.u32 7, %s756_s16  }
  0x20   : > { %v157_v3 = vld [vmem:[%s137_s10] sm:$0xf]  ;;  %s805_s17 = scalar_lea.vmem [#allocation4], %s163_s11  ;;  %s141_s19 = scalar_lea.vmem [#allocation3], %s793_s8 }
  0x21   : > { %158 = vst [vmem:[#allocation0] sm:$0xf] %v157_v3  ;;  %s148_s20 = scalar_lea.vmem [#allocation5], %s797_s9  ;;  %s154_s21 = scalar_lea.vmem [#allocation8], %s797_s9 }
  0x22   : > { %172 = vst [vmem:[#allocation9] sm:$0xff] %v800_v2  ;;  %s811_s22 = scalar_lea.vmem [#allocation7], %s163_s11  ;;  %s813_s26 = smov 0  }
  0x23   : > { %167 = vst [vmem:[%s805_s17] sm:$0x1] %v714_v4 }
  0x28   : > { %v161_v5 = vld [vmem:[#allocation0] sm:$0xff] }
  0x29   : > { %162 = vst [vmem:[#allocation2] sm:$0xff] %v161_v5 }
  0x2a LB: >> { %vm188_vm0 = vcmp.lt.s32.totalorder %v800_v2, 4  ;;  %v820_v8 = vstv %s712_s26  ;;  %s229_s27 = ssub.s32 128, %s712_s26  ;;  %v235_v39 = vand.u32 127, %v168_v1  ;;  %s241_s28 = scalar_lea.vmem [#allocation2], %s712_s26  ;;  %v238_v42 = vld [vmem:[%s805_s17] ss:$0 sm:$0xff]  ;;  %s712_s26 = sphi %s813_s26, %s178_s26  }
  0x2b   : >> { %vm187_vm1 = vcmp.ge.s32.totalorder %v800_v2, %v820_v8  ;;  %s247_s4 = scalar_lea.vmem [#allocation9], %s712_s26  ;;  %vm267_vm14 = vcmp.gt.s32.totalorder %v800_v2, %v820_v8  ;;  %s178_s26 = sadd.s32 1, %s712_s26  }
  0x2c   : >> { %vm189_vm3 = vmand %vm187_vm1, %vm188_vm0  ;;  %vm236_vm12 = vcmp.eq.s32.totalorder %v235_v39, %v820_v8  ;;  %v249_v44 = vld [vmem:[%s247_s4] ss:$0 sm:$0xff]  ;;  %p175_p11 = scmp.ge.s32.totalorder %s178_s26, 4  }
  0x2d   : > { %s409_s6 = sshrl.u32 (%p175_p11), %s756_s16, 3  ;;  %s415_s26 = sshll.u32 (%p175_p11), %s148_s20, 4  ;;  %s416_s26 = int_to_ptr.vmem [resolvable:$true] %s415_s26 }
  0x2e   : > { %s852_s10 = sshll.u32 (%p175_p11), %s409_s6, 1  ;;  %s363_s6 = scalar_lea.sflag (%p175_p11), [#allocation6], %s146_s7 }
  0x30   : >> { %v183_v6 = vld [vmem:[#allocation2] sm:$0xff]  ;;  %v243_v40 = vld [vmem:[%s241_s28] ss:$0 sm:$0xff] }
  0x31   : >> { %v184_v7 = vand.u32 2147483647, %v183_v6 }
  0x33   : >> { %vm581_vm2 = vcmp.gt.f32.partialorder %v184_v7, -inf }
  0x34   : >> { %vm191_vm4 = vmand %vm189_vm3, %vm581_vm2 }
  0x35   : >> { %v192_v9 = vsel %vm191_vm4, %v800_v2, %v820_v8  ;;  %v193_v10 = vsel %vm191_vm4, %v184_v7, -inf  ;;  %vm284_vm4 = vmand %vm267_vm14, %vm236_vm12 }
  0x36   : >> { %v194_v11 = vrot.slane %v193_v10, 1  ;;  %v195_v12 = vrot.slane %v192_v9, 1 }
  0x38   : >> { %vm196_vm5 = vcmp.ge.f32.partialorder %v194_v11, %v193_v10  ;;  %v199_v13 = vrot.slane %v194_v11, 1  ;;  %v200_v14 = vrot.slane %v195_v12, 1 }
  0x39   : >> { %v197_v15 = vsel %vm196_vm5, %v194_v11, %v193_v10  ;;  %v198_v16 = vsel %vm196_vm5, %v195_v12, %v192_v9  ;;  %vm259_vm5 = vcmp.gt.s32.totalorder %v235_v39, %v820_v8 }
  0x3a   : >> { %vm201_vm6 = vcmp.ge.f32.partialorder %v199_v13, %v197_v15  ;;  %v204_v17 = vrot.slane %v199_v13, 1  ;;  %v205_v18 = vrot.slane %v200_v14, 1 }
  0x3b   : >> { %v202_v19 = vsel %vm201_vm6, %v199_v13, %v197_v15  ;;  %v203_v20 = vsel %vm201_vm6, %v200_v14, %v198_v16 }
  0x3c   : >> { %vm206_vm7 = vcmp.ge.f32.partialorder %v204_v17, %v202_v19  ;;  %v209_v21 = vrot.slane %v204_v17, 1  ;;  %v210_v22 = vrot.slane %v205_v18, 1 }
  0x3d   : >> { %v207_v23 = vsel %vm206_vm7, %v204_v17, %v202_v19  ;;  %v208_v24 = vsel %vm206_vm7, %v205_v18, %v203_v20 }
  0x3e   : >> { %vm211_vm8 = vcmp.ge.f32.partialorder %v209_v21, %v207_v23  ;;  %v214_v25 = vrot.slane %v209_v21, 1  ;;  %v215_v26 = vrot.slane %v210_v22, 1 }
  0x3f   : >> { %v212_v27 = vsel %vm211_vm8, %v209_v21, %v207_v23  ;;  %v213_v28 = vsel %vm211_vm8, %v210_v22, %v208_v24 }
  0x40   : >> { %vm216_vm9 = vcmp.ge.f32.partialorder %v214_v25, %v212_v27  ;;  %v219_v29 = vrot.slane %v214_v25, 1  ;;  %v220_v30 = vrot.slane %v215_v26, 1 }
  0x41   : >> { %v217_v31 = vsel %vm216_vm9, %v214_v25, %v212_v27  ;;  %v218_v32 = vsel %vm216_vm9, %v215_v26, %v213_v28 }
  0x42   : >> { %vm221_vm10 = vcmp.ge.f32.partialorder %v219_v29, %v217_v31  ;;  %v224_v33 = vrot.slane %v219_v29, 1  ;;  %v225_v34 = vrot.slane %v220_v30, 1 }
  0x43   : >> { %v222_v35 = vsel %vm221_vm10, %v219_v29, %v217_v31  ;;  %v223_v36 = vsel %vm221_vm10, %v220_v30, %v218_v32 }
  0x44   : >> { %vm226_vm11 = vcmp.ge.f32.partialorder %v224_v33, %v222_v35 }
  0x45   : >> { %v228_v37 = vsel %vm226_vm11, %v225_v34, %v223_v36 }
  0x46   : >> { %230 = vrot.lane.b32.xlu0 %v228_v37, %s229_s27 }
  0xb8   : >> { %v231_v38 = vpop.permute.xlu0 %230 }
  0xb9   : >> { %590 = vpush %v231_v38 }
  0xea   : >> { %s591_s29 = spop %590 }
  0xeb   : >> { %v237_v41 = vstv %s591_s29  ;;  %s242_s30 = scalar_lea.vmem [#allocation2], %s591_s29  ;;  %s248_s5 = scalar_lea.vmem [#allocation9], %s591_s29 }
  0xec   : >> { %v244_v43 = vld [vmem:[%s242_s30] ss:$0 sm:$0xff]  ;;  %v239_v46 = vsel %vm236_vm12, %v237_v41, %v238_v42 }
  0xed   : >> { %v250_v45 = vld [vmem:[%s248_s5] ss:$0 sm:$0xff]  ;;  %245 = vst [vmem:[%s242_s30] sm:$0x1] %v243_v40  ;;  %vm253_vm13 = vcmp.ne.f32.partialorder %v244_v43, 0.0  ;;  %v260_v62 = vsel %vm259_vm5, %v244_v43, 0.0 }
  0xee   : >> { %246 = vst [vmem:[%s241_s28] sm:$0x1] %v244_v43  ;;  %vm254_vm15 = vmand %vm236_vm12, %vm253_vm13  ;;  %s413_s28 = scalar_lea.hbm (%p175_p11), %s913_s2, %s852_s10 }
  0xef   : >> { %251 = vst [vmem:[%s248_s5] sm:$0x1] %v249_v44  ;;  %v255_v47 = vsel %vm254_vm15, %v244_v43, 1.0  ;;  %s417_s29 = sshll.u32 (%p175_p11), %s413_s28, 4  ;;  %s418_s29 = int_to_ptr.hbm [resolvable:$true] %s417_s29 }
  0xf0   : >> { %252 = vst [vmem:[%s247_s4] sm:$0x1] %v250_v45  ;;  %v268_v48 = vsel %vm267_vm14, %v255_v47, 1.0  ;;  %s656_s11 = sshra.s32 (%p175_p11), %s418_s29, 4  ;;  %s657_s11 = int_to_ptr.hbm [resolvable:$true] %s656_s11 }
  0xf1   : >> { %640 = vrcp.f32 %v268_v48  ;;  %240 = vst [vmem:[%s805_s17] sm:$0x1] %v239_v46  ;;  %v280_v52 = vand.u32 2147483648, %v268_v48  ;;  %v278_v54 = vand.u32 2147483647, %v268_v48  ;;  %vm274_vm1 = vweird.f32 %v268_v48  ;;  %s585_s17 = sshll.u32 (%p175_p11), %s756_s16, 2  ;;  %s658_s16 = scalar_lea.hbm (%p175_p11), %s657_s11, 2 }
  0xf2   : > { %s372_s5 = scalar_lea.vmem (%p175_p11), %s912_s1, %s585_s17  ;;  %p659_p12 = scmp.ne.s32.totalorder (%p175_p11), %s657_s11, %s658_s16 }
  0xf3   : >> { %v281_v56 = vor.u32 1.1754944e-38, %v280_v52  ;;  %vm279_vm3 = vcmp.eq.f32.partialorder %v278_v54, 8.507059e+37  ;;  %s662_s17 = scalar_lea.hbm (%p175_p11), %s913_s2, 2  ;;  %p663_p1 = scmp.lt.s32.totalorder (%p175_p11), %s657_s11, %s913_s2 }
  0xf4   : > { %p660_p13 = pnand (%p175_p11), %p659_p12, %p773_p5  ;;  %p664_p2 = scmp.lt.s32.totalorder (%p175_p11), %s662_s17, %s658_s16 }
  0xf5   : >> { %v264_v58 = vld [vmem:[#allocation2] sm:$0xff] }
  0xf6   : > { %p661_p0 = pneg (%p175_p11), %p660_p13  ;;  %p665_p3 = por (%p175_p11), %p664_p2, %p663_p1 }
  0xf7   : >> { %v641_v49 = vpop.eup %640  ;;  %v291_v4 = vld [vmem:[#allocation9] sm:$0xff] (%p175_p11) }
  0xf8   : >> { %v270_v50 = vmul.f32 %v641_v49, %v268_v48  ;;  %vm275_vm0 = vweird.f32 %v641_v49  ;;  %v348_v1 = vld [vmem:[#allocation4] sm:$0x3] (%p175_p11)  ;;  %p666_p4 = pnand (%p175_p11), %p665_p3, %p661_p0 }
  0xf9   : >> { %vm276_vm2 = vmor %vm274_vm1, %vm275_vm0  ;;  %351 = vst [vmem:[%s148_s20] sm:$0x3] (%p175_p11), %v348_v1 }
  0xfa   : >> { %v271_v51 = vsub.f32 1.0, %v270_v50 }
  0xfc   : >> { %v272_v53 = vmul.f32 %v641_v49, %v271_v51 }
  0xfe   : >> { %v273_v55 = vadd.f32 %v641_v49, %v272_v53 }
 0x100   : >> { %v277_v57 = vsel %vm276_vm2, %v641_v49, %v273_v55 }
 0x101   : >> { %v282_v59 = vsel %vm279_vm3, %v281_v56, %v277_v57 }
 0x102   : >> { %v283_v60 = vmul.f32 %v282_v59, %v264_v58 }
 0x104   : >> { %v285_v61 = vsel %vm284_vm4, %v283_v60, 0.0 }
 0x105   : >> { %286 = vadd.xlane.f32.xlu0 %v285_v61 }
 0x12e   : > { %307 = vxpose.xlu0.b32.start.end [1/1] (short) (narrow) (%p175_p11), %v291_v4, 8 }
 0x178   : >> { %v287_v63 = vpop.xlane.xlu0 %286 }
 0x179   : >> { %v288_v0 = vmul.f32 %v287_v63, %v260_v62  ;;  %177 = sbr.rel (!%p175_p11) target bundleno = 42 (0x2a), region = 202 }
 0x17b   : >> { %v289_v3 = vsub.f32 %v283_v60, %v288_v0 }
 0x17d   : >> { %290 = vst [vmem:[#allocation2] sm:$0xff] %v289_v3 }
 0x184   : > { %v342_v5 = vld [vmem:[#allocation2] sm:$0xf] }
 0x185   : > { %345 = vst [vmem:[%s141_s19] sm:$0xf] %v342_v5 }
 0x18c   : > { %v389_v2 = vld [vmem:[%s141_s19] sm:$0xf] }
 0x18d   : > { %390 = vst [vmem:[%s372_s5] sm:$0xf] %v389_v2 }
 0x18e   : > { %669 = shalt.err (!%p666_p4)
}
 0x18f   : > { %592 = dma.vmem_to_hbm [thread:$0]  (%p773_p5), %s416_s26, 32, %s418_s29, %s363_s6  }
 0x190   : > { %s426_s19 = scalar_lea.vmem (%p773_p5), %s914_s3, %s852_s10 }
 0x1d2   : > { %v323_v6 = vpop.trf.xlu0 }
 0x1d3   : > { %339 = vst [vmem:[%s811_s22] sm:$0x1] %v323_v6 }
 0x1d7   : > { %423 = sbr.rel (!%p773_p5) target bundleno = 484 (0x1e4), region = 96 }
 0x1da   : > { %v354_v7 = vld [vmem:[#allocation7] sm:$0x3] }
 0x1db   : > { %357 = vst [vmem:[%s154_s21] sm:$0x3] %v354_v7 }
 0x1e2   : > { %v443_v8 = vld [vmem:[%s154_s21] sm:$0x3] }
 0x1e3   : > { %444 = vst [vmem:[%s426_s19] sm:$0x3] %v443_v8 }
 0x1e4 PF: > { %s472_s20 = sand.u32 1, %s696_s12   ;;  %p595_p8 = pnand %p573_p7, %p777_p6 }
 0x1e5   : > { %s473_s24 = scalar_lea.sflag [#allocation6], %s472_s20 }
 0x1e6   : > { %p596_p9 = pneg %p595_p8 }
 0x1e8   : > { %691 = dma.done.wait (%p596_p9), %s473_s24, 32  }
 0x1e9   : > { %693 = vsyncadd (%p596_p9), %s473_s24, 4294967264  ;;  %p10_p5 = scmp.ge.s32.totalorder %s760_s18, 4   ;;  %s917_s12 = smov %s700_s13 }
 0x1ea   : > { %s918_s13 = smov %s704_s14  ;;  %s919_s14 = smov %s771_s23 }
 0x1eb   : > { %s920_s15 = smov %s760_s18  ;;  %12 = sbr.rel (!%p10_p5) target bundleno = 3 (0x3), region = 213 }
 0x1f0   :  { %486 = vsyncpa [#allocation6], 1 }
 0x1f1   :  { %488 = vsyncpa [#allocation6 + $0x1], 1 }

// kernel: custom-call.33
= control target key start
LH: loop header
LB: loop body
LE: loop exit
PB: predicated region body
PF: predicated region fallthrough
CT: control target
= control target key end

     0   :  { %s383_s6 = smov 0   ;;  %s385_s7 = smov 0   ;;  %s432_s0 = inlined_call_operand.vmem [shape: f32[2,1,4,4], index: 0, kind: input, shape index: {}]   ;;  %s433_s1 = inlined_call_operand.vmem [shape: f32[2,1,4,4], index: 1, kind: output, shape index: {}]  }
   0x1   :  { %s387_s8 = smov 0  }
   0x2 LB: > { %s309_s9 = sadd.s32 4294967295, %s370_s8   ;;  %s33_s10 = sadd.s32 1, %s366_s7  ;;  %s370_s8 = sphi %s387_s8, %s7_s8   ;;  %s366_s7 = sphi %s385_s7, %s435_s7   ;;  %s362_s6 = sphi %s383_s6, %s434_s6  }
   0x3   : > { %p35_p0 = scmp.ge.s32.totalorder %s33_s10, 2  ;;  %p311_p1 = scmp.ge.s32.totalorder %s370_s8, 2 }
   0x4   : > { %s49_s11 = sand.u32 (!%p311_p1), 1, %s370_s8   ;;  %s313_s12 = sshll.u32 (!%p311_p1), %s366_s7, 2 }
   0x5   : > { %s437_s10 = smov (%p35_p0, %s33_s10), 0  ;;  %47 = sbr.rel (%p311_p1) target bundleno = 12 (0xc), region = 16 }
   0x6   : > { %s312_s13 = sshll.u32 (!%p311_p1), %s49_s11, 2  ;;  %s56_s16 = scalar_lea.vmem (!%p311_p1), %s432_s0, %s313_s12 }
   0x7   : > { %s51_s17 = scalar_lea.vmem (!%p311_p1), [#allocation1], %s312_s13 }
   0xa   : > { %v73_v0 = vld [vmem:[%s56_s16] sm:$0xf] }
   0xb   : > { %74 = vst [vmem:[%s51_s17] sm:$0xf] %v73_v0 }
   0xc PF: > { %p314_p2 = scmp.ge.s32.totalorder %s370_s8, 1  ;;  %p91_p3 = scmp.lt.s32.totalorder %s370_s8, 3 }
   0xe   : > { %p92_p4 = pnand %p314_p2, %p91_p3 }
  0x10   : > { %95 = sbr.rel (%p92_p4) target bundleno = 556 (0x22c), region = 50 }
  0x15   : > { %s410_s18 = sand.u32 1, %s309_s9   ;;  %v113_v1 = vlaneseq  ;;  %v372_v20 = vmov -1.0   ;;  %s318_s22 = sshll.u32 %s362_s6, 2 }
  0x16   : > { %s315_s19 = sshll.u32 %s410_s18, 2  ;;  %s216_s25 = scalar_lea.vmem %s433_s1, %s318_s22 }
  0x17   : > { %s104_s20 = scalar_lea.vmem [#allocation1], %s315_s19  ;;  %v114_v3 = vand.u32 127, %v113_v1  ;;  %v117_v4 = vshrl.u32 %v113_v1, 7  ;;  %s108_s21 = scalar_lea.vmem [#allocation3], %s315_s19 }
  0x18   : > { %v111_v2 = vld [vmem:[%s104_s20] sm:$0xf] }
  0x19   : > { %112 = vst [vmem:[#allocation0] sm:$0xf] %v111_v2  ;;  %vm119_vm0 = vcmp.eq.s32.totalorder %v117_v4, %v114_v3  ;;  %vm115_vm1 = vcmp.lt.s32.totalorder %v114_v3, 4  ;;  %vm124_vm2 = vcmp.ge.s32.totalorder %v117_v4, %v114_v3  ;;  %vm151_vm8 = vcmp.eq.s32.totalorder %v114_v3, 0 }
  0x1a   : > { %vm125_vm3 = vmand %vm124_vm2, %vm115_vm1  ;;  %vm148_vm9 = vcmp.eq.s32.totalorder %v114_v3, %v117_v4  ;;  %v152_v21 = vsel %vm151_vm8, 1.0, %v372_v20  ;;  %vm159_vm10 = vcmp.eq.s32.totalorder %v114_v3, 1  ;;  %vm169_vm11 = vcmp.eq.s32.totalorder %v114_v3, 2 }
  0x1b   : > { %v153_v22 = vsel %vm148_vm9, %v152_v21, 0.0  ;;  %vm179_vm12 = vcmp.eq.s32.totalorder %v114_v3, 3 }
  0x20   : > { %v120_v5 = vld [vmem:[#allocation0] sm:$0xff] }
  0x21   : > { %v121_v6 = vsel %vm119_vm0, %v120_v5, 0.0  ;;  %v126_v15 = vsel %vm125_vm3, %v120_v5, 0.0 }
  0x22   : > { %122 = vadd.xlane.f32.xlu0 %v121_v6 }
  0x95   : > { %v123_v7 = vpop.xlane.xlu0 %122 }
  0x96   : > { %346 = vrcp.f32 %v123_v7  ;;  %v138_v11 = vand.u32 2147483648, %v123_v7  ;;  %v136_v13 = vand.u32 2147483647, %v123_v7  ;;  %vm132_vm5 = vweird.f32 %v123_v7 }
  0x98   : > { %v139_v16 = vor.u32 1.1754944e-38, %v138_v11  ;;  %vm137_vm7 = vcmp.eq.f32.partialorder %v136_v13, 8.507059e+37 }
  0x9c   : > { %v347_v8 = vpop.eup %346 }
  0x9d   : > { %v128_v9 = vmul.f32 %v347_v8, %v123_v7  ;;  %vm133_vm4 = vweird.f32 %v347_v8 }
  0x9e   : > { %vm134_vm6 = vmor %vm132_vm5, %vm133_vm4 }
  0x9f   : > { %v129_v10 = vsub.f32 1.0, %v128_v9 }
  0xa1   : > { %v130_v12 = vmul.f32 %v347_v8, %v129_v10 }
  0xa3   : > { %v131_v14 = vadd.f32 %v347_v8, %v130_v12 }
  0xa5   : > { %v135_v17 = vsel %vm134_vm6, %v347_v8, %v131_v14 }
  0xa6   : > { %v140_v18 = vsel %vm137_vm7, %v139_v16, %v135_v17 }
  0xa7   : > { %v141_v19 = vmul.f32 %v140_v18, %v126_v15 }
  0xa9   : > { %142 = vst [vmem:[#allocation4] sm:$0xff] %v141_v19 }
  0xb0   : > { %v155_v23 = vld [vmem:[#allocation4 + $0x1] ss:$0 sm:$0xff]  ;;  %v165_v26 = vld [vmem:[#allocation4 + $0x2] ss:$0 sm:$0xff]  ;;  %v175_v31 = vld [vmem:[#allocation4 + $0x3] ss:$0 sm:$0xff] }
  0xb1   : > { %v156_v24 = vxor.u32 2147483648, %v155_v23  ;;  %v166_v28 = vxor.u32 2147483648, %v165_v26  ;;  %v176_v33 = vxor.u32 2147483648, %v175_v31 }
  0xb3   : > { %v160_v25 = vmul.f32 %v156_v24, %v153_v22 }
  0xb5   : > { %161 = vadd.xlane.f32.xlu0 %v160_v25 }
 0x128   : > { %v162_v27 = vpop.xlane.xlu0 %161 }
 0x129   : > { %v163_v29 = vsel %vm159_vm10, %v162_v27, %v153_v22 }
 0x12a   : > { %v170_v30 = vmul.f32 %v166_v28, %v163_v29 }
 0x12c   : > { %171 = vadd.xlane.f32.xlu1 %v170_v30 }
 0x19f   : > { %v172_v32 = vpop.xlane.xlu1 %171 }
 0x1a0   : > { %v173_v34 = vsel %vm169_vm11, %v172_v32, %v163_v29 }
 0x1a1   : > { %v180_v35 = vmul.f32 %v176_v33, %v173_v34 }
 0x1a3   : > { %181 = vadd.xlane.f32.xlu1 %v180_v35 }
 0x216   : > { %v182_v36 = vpop.xlane.xlu1 %181 }
 0x217   : > { %v183_v37 = vsel %vm179_vm12, %v182_v36, %v173_v34 }
 0x218   : > { %v198_v38 = vmul.f32 %v183_v37, %v140_v18 }
 0x21a   : > { %v200_v39 = vsel %vm132_vm5, %v183_v37, %v198_v38 }
 0x21b   : > { %201 = vst [vmem:[#allocation2] sm:$0xff] %v200_v39 }
 0x222   : > { %v204_v40 = vld [vmem:[#allocation2] sm:$0xf] }
 0x223   : > { %207 = vst [vmem:[%s108_s21] sm:$0xf] %v204_v40 }
 0x22a   : > { %v233_v41 = vld [vmem:[%s108_s21] sm:$0xf] }
 0x22b   : > { %234 = vst [vmem:[%s216_s25] sm:$0xf] %v233_v41 }
 0x22c PF: > { %s7_s8 = sadd.s32 1, %s370_s8   ;;  %s434_s6 = smov %s366_s7 }
 0x22d   : > { %p4_p5 = scmp.ge.s32.totalorder %s7_s8, 4   ;;  %s435_s7 = smov %s437_s10 }
 0x22f   :  { %6 = sbr.rel (!%p4_p5) target bundleno = 2 (0x2), region = 113 }

// kernel: custom-call.32
= control target key start
LH: loop header
LB: loop body
LE: loop exit
PB: predicated region body
PF: predicated region fallthrough
CT: control target
= control target key end

     0   :  { %s382_s6 = smov 0   ;;  %s384_s7 = smov 0   ;;  %s431_s0 = inlined_call_operand.vmem [shape: f32[2,1,4,4], index: 0, kind: input, shape index: {}]   ;;  %s432_s1 = inlined_call_operand.vmem [shape: f32[2,1,4,4], index: 1, kind: output, shape index: {}]  }
   0x1   :  { %s386_s8 = smov 0  }
   0x2 LB: > { %s308_s9 = sadd.s32 4294967295, %s369_s8   ;;  %s33_s10 = sadd.s32 1, %s365_s7  ;;  %s369_s8 = sphi %s386_s8, %s7_s8   ;;  %s365_s7 = sphi %s384_s7, %s434_s7   ;;  %s361_s6 = sphi %s382_s6, %s433_s6  }
   0x3   : > { %p35_p0 = scmp.ge.s32.totalorder %s33_s10, 2  ;;  %p310_p1 = scmp.ge.s32.totalorder %s369_s8, 2 }
   0x4   : > { %s49_s11 = sand.u32 (!%p310_p1), 1, %s369_s8   ;;  %s312_s12 = sshll.u32 (!%p310_p1), %s365_s7, 2 }
   0x5   : > { %s436_s10 = smov (%p35_p0, %s33_s10), 0  ;;  %47 = sbr.rel (%p310_p1) target bundleno = 12 (0xc), region = 16 }
   0x6   : > { %s311_s13 = sshll.u32 (!%p310_p1), %s49_s11, 2  ;;  %s56_s16 = scalar_lea.vmem (!%p310_p1), %s431_s0, %s312_s12 }
   0x7   : > { %s51_s17 = scalar_lea.vmem (!%p310_p1), [#allocation1], %s311_s13 }
   0xa   : > { %v73_v0 = vld [vmem:[%s56_s16] sm:$0xf] }
   0xb   : > { %74 = vst [vmem:[%s51_s17] sm:$0xf] %v73_v0 }
   0xc PF: > { %p313_p2 = scmp.ge.s32.totalorder %s369_s8, 1  ;;  %p91_p3 = scmp.lt.s32.totalorder %s369_s8, 3 }
   0xe   : > { %p92_p4 = pnand %p313_p2, %p91_p3 }
  0x10   : > { %95 = sbr.rel (%p92_p4) target bundleno = 556 (0x22c), region = 50 }
  0x15   : > { %s409_s18 = sand.u32 1, %s308_s9   ;;  %v113_v1 = vlaneseq  ;;  %v371_v20 = vmov -1.0   ;;  %s317_s22 = sshll.u32 %s361_s6, 2 }
  0x16   : > { %s314_s19 = sshll.u32 %s409_s18, 2  ;;  %s215_s25 = scalar_lea.vmem %s432_s1, %s317_s22 }
  0x17   : > { %s104_s20 = scalar_lea.vmem [#allocation1], %s314_s19  ;;  %v114_v3 = vand.u32 127, %v113_v1  ;;  %v117_v4 = vshrl.u32 %v113_v1, 7  ;;  %s108_s21 = scalar_lea.vmem [#allocation3], %s314_s19 }
  0x18   : > { %v111_v2 = vld [vmem:[%s104_s20] sm:$0xf] }
  0x19   : > { %112 = vst [vmem:[#allocation0] sm:$0xf] %v111_v2  ;;  %vm119_vm0 = vcmp.eq.s32.totalorder %v117_v4, %v114_v3  ;;  %vm115_vm1 = vcmp.lt.s32.totalorder %v114_v3, 4  ;;  %vm124_vm2 = vcmp.le.s32.totalorder %v117_v4, %v114_v3  ;;  %vm151_vm8 = vcmp.eq.s32.totalorder %v114_v3, 3 }
  0x1a   : > { %vm125_vm3 = vmand %vm124_vm2, %vm115_vm1  ;;  %vm148_vm9 = vcmp.eq.s32.totalorder %v114_v3, %v117_v4  ;;  %v152_v21 = vsel %vm151_vm8, 1.0, %v371_v20  ;;  %vm159_vm10 = vcmp.eq.s32.totalorder %v114_v3, 2  ;;  %vm169_vm11 = vcmp.eq.s32.totalorder %v114_v3, 1 }
  0x1b   : > { %v153_v22 = vsel %vm148_vm9, %v152_v21, 0.0  ;;  %vm178_vm12 = vcmp.eq.s32.totalorder %v114_v3, 0 }
  0x20   : > { %v120_v5 = vld [vmem:[#allocation0] sm:$0xff] }
  0x21   : > { %v121_v6 = vsel %vm119_vm0, %v120_v5, 0.0  ;;  %v126_v15 = vsel %vm125_vm3, %v120_v5, 0.0 }
  0x22   : > { %122 = vadd.xlane.f32.xlu0 %v121_v6 }
  0x95   : > { %v123_v7 = vpop.xlane.xlu0 %122 }
  0x96   : > { %345 = vrcp.f32 %v123_v7  ;;  %v138_v11 = vand.u32 2147483648, %v123_v7  ;;  %v136_v13 = vand.u32 2147483647, %v123_v7  ;;  %vm132_vm5 = vweird.f32 %v123_v7 }
  0x98   : > { %v139_v16 = vor.u32 1.1754944e-38, %v138_v11  ;;  %vm137_vm7 = vcmp.eq.f32.partialorder %v136_v13, 8.507059e+37 }
  0x9c   : > { %v346_v8 = vpop.eup %345 }
  0x9d   : > { %v128_v9 = vmul.f32 %v346_v8, %v123_v7  ;;  %vm133_vm4 = vweird.f32 %v346_v8 }
  0x9e   : > { %vm134_vm6 = vmor %vm132_vm5, %vm133_vm4 }
  0x9f   : > { %v129_v10 = vsub.f32 1.0, %v128_v9 }
  0xa1   : > { %v130_v12 = vmul.f32 %v346_v8, %v129_v10 }
  0xa3   : > { %v131_v14 = vadd.f32 %v346_v8, %v130_v12 }
  0xa5   : > { %v135_v17 = vsel %vm134_vm6, %v346_v8, %v131_v14 }
  0xa6   : > { %v140_v18 = vsel %vm137_vm7, %v139_v16, %v135_v17 }
  0xa7   : > { %v141_v19 = vmul.f32 %v140_v18, %v126_v15 }
  0xa9   : > { %142 = vst [vmem:[#allocation4] sm:$0xff] %v141_v19 }
  0xb0   : > { %v155_v23 = vld [vmem:[#allocation4 + $0x2] ss:$0 sm:$0xff]  ;;  %v165_v26 = vld [vmem:[#allocation4 + $0x1] ss:$0 sm:$0xff]  ;;  %v174_v31 = vld [vmem:[#allocation4] ss:$0 sm:$0xff] }
  0xb1   : > { %v156_v24 = vxor.u32 2147483648, %v155_v23  ;;  %v166_v28 = vxor.u32 2147483648, %v165_v26  ;;  %v175_v33 = vxor.u32 2147483648, %v174_v31 }
  0xb3   : > { %v160_v25 = vmul.f32 %v156_v24, %v153_v22 }
  0xb5   : > { %161 = vadd.xlane.f32.xlu0 %v160_v25 }
 0x128   : > { %v162_v27 = vpop.xlane.xlu0 %161 }
 0x129   : > { %v163_v29 = vsel %vm159_vm10, %v162_v27, %v153_v22 }
 0x12a   : > { %v170_v30 = vmul.f32 %v166_v28, %v163_v29 }
 0x12c   : > { %171 = vadd.xlane.f32.xlu1 %v170_v30 }
 0x19f   : > { %v172_v32 = vpop.xlane.xlu1 %171 }
 0x1a0   : > { %v173_v34 = vsel %vm169_vm11, %v172_v32, %v163_v29 }
 0x1a1   : > { %v179_v35 = vmul.f32 %v175_v33, %v173_v34 }
 0x1a3   : > { %180 = vadd.xlane.f32.xlu1 %v179_v35 }
 0x216   : > { %v181_v36 = vpop.xlane.xlu1 %180 }
 0x217   : > { %v182_v37 = vsel %vm178_vm12, %v181_v36, %v173_v34 }
 0x218   : > { %v197_v38 = vmul.f32 %v182_v37, %v140_v18 }
 0x21a   : > { %v199_v39 = vsel %vm132_vm5, %v182_v37, %v197_v38 }
 0x21b   : > { %200 = vst [vmem:[#allocation2] sm:$0xff] %v199_v39 }
 0x222   : > { %v203_v40 = vld [vmem:[#allocation2] sm:$0xf] }
 0x223   : > { %206 = vst [vmem:[%s108_s21] sm:$0xf] %v203_v40 }
 0x22a   : > { %v232_v41 = vld [vmem:[%s108_s21] sm:$0xf] }
 0x22b   : > { %233 = vst [vmem:[%s215_s25] sm:$0xf] %v232_v41 }
 0x22c PF: > { %s7_s8 = sadd.s32 1, %s369_s8   ;;  %s433_s6 = smov %s365_s7 }
 0x22d   : > { %p4_p5 = scmp.ge.s32.totalorder %s7_s8, 4   ;;  %s434_s7 = smov %s436_s10 }
 0x22f   :  { %6 = sbr.rel (!%p4_p5) target bundleno = 2 (0x2), region = 112 }

// kernel: depthnet_forward.1
= control target key start
LH: loop header
LB: loop body
LE: loop exit
PB: predicated region body
PF: predicated region fallthrough
CT: control target
= control target key end

     0   :  { %s1668_s0 = inlined_call_operand.vmem [shape: f32[8], index: 0, kind: input, shape index: {}]   ;;  %s1669_s1 = inlined_call_operand.<no memory space> [shape: f32[1], index: 1, kind: input, shape index: {}]   ;;  %s1670_s2 = inlined_call_operand.vmem [shape: bf16[3,2,8,8,256], index: 2, kind: input, shape index: {}]   ;;  %s1671_s3 = inlined_call_operand.vmem [shape: f32[2,10,8], index: 3, kind: input, shape index: {}]   ;;  %s1672_s4 = inlined_call_operand.vmem [shape: f32[2,1,256], index: 4, kind: output, shape index: {0}]   ;;  %s1673_s5 = inlined_call_operand.vmem [shape: f32[2,1,256], index: 5, kind: output, shape index: {1}]  }
   0x1   :  { %11 = sst [smem:[#allocation2]] %s1669_s1 }
   0x2   :  { %12 = vsyncpa [#allocation4], 0  ;;  %s1302_s20 = smov 0   ;;  %s1304_s21 = smov 0  }
   0x3   :  { %s1306_s22 = smov 0   ;;  %s1308_s23 = smov 0  }
   0x4   :  { %s1310_s24 = smov 0  }
   0x5 LB: > { %s1081_s1 = sadd.s32 4294967295, %s1265_s24   ;;  %s30_s25 = sadd.s32 1, %s1261_s23  ;;  %s1265_s24 = sphi %s1310_s24, %s18_s24   ;;  %s1261_s23 = sphi %s1308_s23, %s1682_s23   ;;  %s1257_s22 = sphi %s1306_s22, %s1681_s22   ;;  %s1253_s21 = sphi %s1304_s21, %s1680_s21   ;;  %s1249_s20 = sphi %s1302_s20, %s1679_s20  }
   0x6   : > { %p32_p0 = scmp.ge.s32.totalorder %s30_s25, 2  ;;  %s81_s26 = sadd.s32 1, %s1253_s21 }
   0x7   : > { %p88_p1 = scmp.ne.s32.totalorder %s1253_s21, %s1249_s20  ;;  %p89_p2 = scmp.eq.s32.totalorder %s1265_s24, 0 }
   0x8   : > { %s1684_s25 = smov (%p32_p0, %s30_s25), 0  ;;  %p1083_p4 = scmp.ge.s32.totalorder %s1265_s24, 1 }
   0x9   : > { %p1335_p3 = por %p89_p2, %p88_p1  ;;  %s76_s28 = ssub.s32 %s1261_s23, %s1684_s25 }
   0xa   : > { %p187_p5 = scmp.lt.s32.totalorder %s1265_s24, 3  ;;  %p79_p6 = scmp.eq.s32.totalorder %s76_s28, 0 }
   0xb   : > { %p1347_p8 = scmp.eq.s32.totalorder %s1081_s1, 0  ;;  %s199_s9 = sshll.u32 %s1668_s0, 4  ;;  %s200_s9 = int_to_ptr.vmem [resolvable:$true] %s199_s9 }
   0xc   : > { %p1343_p7 = pnand %p1083_p4, %p187_p5  ;;  %s1267_s10 = smov [#allocation3]  }
   0xd   : > { %s1352_s6 = scalar_select %p79_p6, %s1253_s21, %s81_s26  }
   0xe   : > { %p1152_p9 = pneg %p1343_p7  ;;  %p1085_p11 = scmp.ge.s32.totalorder %s1265_s24, 2 }
  0x10   : > { %p1153_p10 = pnand %p1347_p8, %p1152_p9  ;;  %209 = sbr.rel (%p1085_p11) target bundleno = 49 (0x31), region = 24 }
  0x12   : > { %1155 = dma.vmem_to_smem (!%p1153_p10), %s200_s9, 16, %s1267_s10, [#allocation4]  }
  0x15   : > { %212 = sbr.rel (!%p1335_p3) target bundleno = 49 (0x31), region = 28  ;;  %s214_s11 = sand.u32 (%p1335_p3), 1, %s1253_s21  }
  0x16   : > { %s1132_s12 = sshll.u32 (%p1335_p3), %s1261_s23, 6  ;;  %s1136_s13 = smul.u32 (%p1335_p3), 192, %s214_s11 }
  0x17   : > { %s1369_s16 = scalar_lea.vmem (%p1335_p3), %s1670_s2, %s1132_s12 }
  0x18   : > { %v296_v0 = vld [vmem:[%s1369_s16] sm:$0xff] (%p1335_p3)  ;;  %v298_v1 = vld [vmem:[%s1369_s16 + $0x8] sm:$0xff] (%p1335_p3)  ;;  %v300_v2 = vld [vmem:[%s1369_s16 + $0x10] sm:$0xff] (%p1335_p3)  ;;  %s1374_s17 = scalar_lea.vmem (%p1335_p3), [#allocation5], %s1136_s13 }
  0x19   : > { %297 = vst [vmem:[%s1374_s17] sm:$0xff] (%p1335_p3), %v296_v0  ;;  %v302_v3 = vld [vmem:[%s1369_s16 + $0x18] sm:$0xff] (%p1335_p3)  ;;  %v304_v4 = vld [vmem:[%s1369_s16 + $0x20] sm:$0xff] (%p1335_p3)  ;;  %v306_v5 = vld [vmem:[%s1369_s16 + $0x28] sm:$0xff] (%p1335_p3) }
  0x1a   : > { %299 = vst [vmem:[%s1374_s17 + $0x8] sm:$0xff] %v298_v1  ;;  %v308_v6 = vld [vmem:[%s1369_s16 + $0x30] sm:$0xff]  ;;  %v310_v7 = vld [vmem:[%s1369_s16 + $0x38] sm:$0xff]  ;;  %v312_v8 = vld [vmem:[%s1369_s16 + $0x80] sm:$0xff] }
  0x1b   : > { %301 = vst [vmem:[%s1374_s17 + $0x10] sm:$0xff] %v300_v2  ;;  %v314_v9 = vld [vmem:[%s1369_s16 + $0x88] sm:$0xff]  ;;  %v316_v10 = vld [vmem:[%s1369_s16 + $0x90] sm:$0xff]  ;;  %v318_v11 = vld [vmem:[%s1369_s16 + $0x98] sm:$0xff] }
  0x1c   : > { %303 = vst [vmem:[%s1374_s17 + $0x18] sm:$0xff] %v302_v3  ;;  %v320_v12 = vld [vmem:[%s1369_s16 + $0xa0] sm:$0xff]  ;;  %v322_v13 = vld [vmem:[%s1369_s16 + $0xa8] sm:$0xff]  ;;  %v324_v14 = vld [vmem:[%s1369_s16 + $0xb0] sm:$0xff] }
  0x1d   : > { %305 = vst [vmem:[%s1374_s17 + $0x20] sm:$0xff] %v304_v4  ;;  %v326_v15 = vld [vmem:[%s1369_s16 + $0xb8] sm:$0xff]  ;;  %v328_v16 = vld [vmem:[%s1369_s16 + $0x100] sm:$0xff]  ;;  %v330_v17 = vld [vmem:[%s1369_s16 + $0x108] sm:$0xff] }
  0x1e   : > { %307 = vst [vmem:[%s1374_s17 + $0x28] sm:$0xff] %v306_v5  ;;  %v332_v18 = vld [vmem:[%s1369_s16 + $0x110] sm:$0xff]  ;;  %v334_v19 = vld [vmem:[%s1369_s16 + $0x118] sm:$0xff]  ;;  %v336_v20 = vld [vmem:[%s1369_s16 + $0x120] sm:$0xff] }
  0x1f   : > { %309 = vst [vmem:[%s1374_s17 + $0x30] sm:$0xff] %v308_v6  ;;  %v338_v21 = vld [vmem:[%s1369_s16 + $0x128] sm:$0xff]  ;;  %v340_v22 = vld [vmem:[%s1369_s16 + $0x130] sm:$0xff]  ;;  %v342_v23 = vld [vmem:[%s1369_s16 + $0x138] sm:$0xff] }
  0x20   : > { %311 = vst [vmem:[%s1374_s17 + $0x38] sm:$0xff] %v310_v7 }
  0x21   : > { %313 = vst [vmem:[%s1374_s17 + $0x40] sm:$0xff] %v312_v8 }
  0x22   : > { %315 = vst [vmem:[%s1374_s17 + $0x48] sm:$0xff] %v314_v9 }
  0x23   : > { %317 = vst [vmem:[%s1374_s17 + $0x50] sm:$0xff] %v316_v10 }
  0x24   : > { %319 = vst [vmem:[%s1374_s17 + $0x58] sm:$0xff] %v318_v11 }
  0x25   : > { %321 = vst [vmem:[%s1374_s17 + $0x60] sm:$0xff] %v320_v12 }
  0x26   : > { %323 = vst [vmem:[%s1374_s17 + $0x68] sm:$0xff] %v322_v13 }
  0x27   : > { %325 = vst [vmem:[%s1374_s17 + $0x70] sm:$0xff] %v324_v14 }
  0x28   : > { %327 = vst [vmem:[%s1374_s17 + $0x78] sm:$0xff] %v326_v15 }
  0x29   : > { %329 = vst [vmem:[%s1374_s17 + $0x80] sm:$0xff] %v328_v16 }
  0x2a   : > { %331 = vst [vmem:[%s1374_s17 + $0x88] sm:$0xff] %v330_v17 }
  0x2b   : > { %333 = vst [vmem:[%s1374_s17 + $0x90] sm:$0xff] %v332_v18 }
  0x2c   : > { %335 = vst [vmem:[%s1374_s17 + $0x98] sm:$0xff] %v334_v19 }
  0x2d   : > { %337 = vst [vmem:[%s1374_s17 + $0xa0] sm:$0xff] %v336_v20 }
  0x2e   : > { %339 = vst [vmem:[%s1374_s17 + $0xa8] sm:$0xff] %v338_v21 }
  0x2f   : > { %341 = vst [vmem:[%s1374_s17 + $0xb0] sm:$0xff] %v340_v22 }
  0x30   : > { %343 = vst [vmem:[%s1374_s17 + $0xb8] sm:$0xff] %v342_v23 }
  0x31 PF: > { %360 = sbr.rel (%p1343_p7) target bundleno = 347 (0x15b), region = 70 }
  0x36   : > { %1244 = dma.done.wait (%p1347_p8), [#allocation4], 16  }
  0x37   : > { %1246 = vsyncadd (%p1347_p8), [#allocation4], 4294967280  ;;  %s368_s18 = sand.u32 1, %s1249_s20  }
  0x38   : > { %s1137_s19 = smul.u32 192, %s368_s18 }
  0x3a   : > { %s1428_s1 = scalar_lea.vmem [#allocation5], %s1137_s19 }
  0x3b   : > { %374 = sfence }
  0x3c   : > { %s1430_s26 = sld [smem:[#allocation2]]  ;;  %v438_v24 = vld [vmem:[%s1428_s1] sm:$0xff]  ;;  %v1441_v30 = vld [vmem:[%s1428_s1 + $0x8] sm:$0xff]  ;;  %v1457_v37 = vld [vmem:[%s1428_s1 + $0x10] sm:$0xff]  ;;  %p413_p12 = scmp.lt.s32.totalorder %s1257_s22, 1  ;;  %vm825_vm0 = vcmask 64512  }
  0x3d   : > { %v1094_v25 = vld [vmem:[%s1428_s1 + $0x40] sm:$0xff]  ;;  %v439_v27 = vunpack.c.l.bf16 %v438_v24  ;;  %s1438_s20 = sld [smem:[#allocation3]]  ;;  %v1444_v31 = vld [vmem:[%s1428_s1 + $0x48] sm:$0xff]  ;;  %v1449_v33 = vunpack.c.h.bf16 %v438_v24  ;;  %v483_v34 = vunpack.c.l.bf16 %v1441_v30  ;;  %v1460_v38 = vld [vmem:[%s1428_s1 + $0x50] sm:$0xff]  ;;  %v527_v51 = vunpack.c.l.bf16 %v1457_v37 }
  0x3e   : > { %v1435_v26 = vld [vmem:[%s1428_s1 + $0x80] sm:$0xff]  ;;  %v449_v28 = vunpack.c.l.bf16 %v1094_v25  ;;  %v1447_v32 = vld [vmem:[%s1428_s1 + $0x88] sm:$0xff]  ;;  %v493_v35 = vunpack.c.l.bf16 %v1444_v31  ;;  %s1454_s27 = sld [smem:[#allocation3 + $0x1]]  ;;  %v1462_v39 = vunpack.c.h.bf16 %v1094_v25  ;;  %v1465_v44 = vld [vmem:[%s1428_s1 + $0x90] sm:$0xff]  ;;  %v537_v52 = vunpack.c.l.bf16 %v1460_v38  ;;  %s1686_s22 = smov (!%p413_p12, %s1257_s22), 1 }
  0x3f   : > { %v459_v29 = vunpack.c.l.bf16 %v1435_v26  ;;  %v503_v36 = vunpack.c.l.bf16 %v1447_v32  ;;  %v443_v40 = vmul.f32 %v439_v27, %v439_v27  ;;  %s1467_s28 = sld [smem:[#allocation3 + $0x2]]  ;;  %v487_v45 = vmul.f32 %v483_v34, %v483_v34  ;;  %v1478_v1 = vld [vmem:[%s1428_s1 + $0x18] sm:$0xff]  ;;  %v1494_v20 = vld [vmem:[%s1428_s1 + $0x20] sm:$0xff]  ;;  %s1133_s10 = sshll.u32 %s1686_s22, 4 }
  0x40   : > { %v451_v41 = vadd.f32 %v449_v28, %v439_v27  ;;  %v453_v42 = vmul.f32 %v449_v28, %v449_v28  ;;  %v495_v46 = vadd.f32 %v493_v35, %v483_v34  ;;  %v497_v47 = vmul.f32 %v493_v35, %v493_v35  ;;  %s1469_s29 = sld [smem:[#allocation3 + $0x3]]  ;;  %v1481_v2 = vld [vmem:[%s1428_s1 + $0x58] sm:$0xff]  ;;  %v1499_v25 = vld [vmem:[%s1428_s1 + $0x60] sm:$0xff]  ;;  %s417_s13 = scalar_lea.vmem %s1671_s3, %s1133_s10 }
  0x41   : > { %v463_v43 = vmul.f32 %v459_v29, %v459_v29  ;;  %v507_v48 = vmul.f32 %v503_v36, %v503_v36  ;;  %v547_v56 = vunpack.c.l.bf16 %v1465_v44  ;;  %v531_v60 = vmul.f32 %v527_v51, %v527_v51  ;;  %s1483_s30 = sld [smem:[#allocation3 + $0x4]]  ;;  %v1486_v7 = vld [vmem:[%s1428_s1 + $0x98] sm:$0xff]  ;;  %v1502_v27 = vld [vmem:[%s1428_s1 + $0xa0] sm:$0xff]  ;;  %s1092_s14 = sshll.u32 %s1686_s22, 1 }
  0x42   : > { %v455_v49 = vadd.f32 %v453_v42, %v443_v40  ;;  %v461_v50 = vadd.f32 %v459_v29, %v451_v41  ;;  %v437_v53 = vstv %s1430_s26  ;;  %v499_v54 = vadd.f32 %v497_v47, %v487_v45  ;;  %s1509_s7 = sld [smem:[#allocation3 + $0x5]]  ;;  %s425_s17 = scalar_lea.vmem %s1672_s4, %s1092_s14 }
  0x43   : > { %v505_v55 = vadd.f32 %v503_v36, %v495_v46  ;;  %v476_v59 = vstv %s1438_s20  ;;  %v539_v0 = vadd.f32 %v537_v52, %v527_v51  ;;  %v541_v5 = vmul.f32 %v537_v52, %v537_v52  ;;  %s1527_s8 = sld [smem:[#allocation3 + $0x6]] }
  0x44   : > { %v465_v57 = vadd.f32 %v463_v43, %v455_v49  ;;  %v469_v58 = vmul.f32 0.33333334, %v461_v50  ;;  %v509_v61 = vadd.f32 %v507_v48, %v499_v54  ;;  %v520_v63 = vstv %s1454_s27  ;;  %v1515_v48 = vld [vmem:[%s1428_s1 + $0x28] sm:$0xff]  ;;  %s1536_s9 = sld [smem:[#allocation3 + $0x7]] }
  0x45   : > { %v513_v62 = vmul.f32 0.33333334, %v505_v55  ;;  %v551_v6 = vmul.f32 %v547_v56, %v547_v56  ;;  %v549_v10 = vadd.f32 %v547_v56, %v539_v0  ;;  %v564_v11 = vstv %s1467_s28  ;;  %v1518_v49 = vld [vmem:[%s1428_s1 + $0x68] sm:$0xff] }
  0x46   : > { %v467_v3 = vmul.f32 0.33333334, %v465_v57  ;;  %v471_v4 = vmul.f32 %v469_v58, %v469_v58  ;;  %v511_v8 = vmul.f32 0.33333334, %v509_v61  ;;  %v543_v13 = vadd.f32 %v541_v5, %v531_v60  ;;  %v1521_v55 = vld [vmem:[%s1428_s1 + $0xa8] sm:$0xff] }
  0x47   : > { %v515_v9 = vmul.f32 %v513_v62, %v513_v62  ;;  %v571_v14 = vunpack.c.l.bf16 %v1478_v1  ;;  %v581_v15 = vunpack.c.l.bf16 %v1481_v2  ;;  %v557_v17 = vmul.f32 0.33333334, %v549_v10 }
  0x48   : > { %v473_v12 = vsub.f32 %v467_v3, %v471_v4  ;;  %v591_v18 = vunpack.c.l.bf16 %v1486_v7  ;;  %v608_v19 = vstv %s1469_s29  ;;  %v553_v22 = vadd.f32 %v551_v6, %v543_v13 }
  0x49   : > { %v517_v16 = vsub.f32 %v511_v8, %v515_v9  ;;  %v575_v23 = vmul.f32 %v571_v14, %v571_v14  ;;  %v583_v24 = vadd.f32 %v581_v15, %v571_v14  ;;  %v559_v29 = vmul.f32 %v557_v17, %v557_v17  ;;  %v1531_v9 = vld [vmem:[%s1428_s1 + $0x30] sm:$0xff] }
  0x4a   : > { %v477_v21 = vmul.f32 %v476_v59, %v473_v12  ;;  %v585_v34 = vmul.f32 %v581_v15, %v581_v15  ;;  %v595_v35 = vmul.f32 %v591_v18, %v591_v18  ;;  %v555_v40 = vmul.f32 0.33333334, %v553_v22  ;;  %v1534_v15 = vld [vmem:[%s1428_s1 + $0x70] sm:$0xff] }
  0x4b   : > { %v521_v28 = vmul.f32 %v520_v63, %v517_v16  ;;  %v593_v41 = vadd.f32 %v591_v18, %v583_v24  ;;  %v615_v42 = vunpack.c.l.bf16 %v1494_v20  ;;  %v625_v45 = vunpack.c.l.bf16 %v1499_v25  ;;  %v1539_v22 = vld [vmem:[%s1428_s1 + $0xb0] sm:$0xff] }
  0x4c   : > { %v479_v36 = vadd.f32 %v477_v21, %v437_v53  ;;  %v587_v43 = vadd.f32 %v585_v34, %v575_v23  ;;  %v635_v46 = vunpack.c.l.bf16 %v1502_v27  ;;  %v652_v47 = vstv %s1483_s30 }
  0x4d   : > { %v561_v51 = vsub.f32 %v555_v40, %v559_v29  ;;  %v601_v52 = vmul.f32 0.33333334, %v593_v41  ;;  %v619_v54 = vmul.f32 %v615_v42, %v615_v42  ;;  %v627_v57 = vadd.f32 %v625_v45, %v615_v42 }
  0x4e   : > { %v523_v50 = vadd.f32 %v521_v28, %v479_v36  ;;  %v597_v56 = vadd.f32 %v595_v35, %v587_v43  ;;  %v629_v58 = vmul.f32 %v625_v45, %v625_v45  ;;  %v639_v60 = vmul.f32 %v635_v46, %v635_v46 }
  0x4f   : > { %v565_v61 = vmul.f32 %v564_v11, %v561_v51  ;;  %v603_v62 = vmul.f32 %v601_v52, %v601_v52  ;;  %v659_v0 = vunpack.c.l.bf16 %v1515_v48  ;;  %v669_v3 = vunpack.c.l.bf16 %v1518_v49 }
  0x50   : > { %v599_v4 = vmul.f32 0.33333334, %v597_v56  ;;  %v631_v5 = vadd.f32 %v629_v58, %v619_v54  ;;  %v637_v6 = vadd.f32 %v635_v46, %v627_v57  ;;  %v679_v8 = vunpack.c.l.bf16 %v1521_v55  ;;  %v1548_v46 = vld [vmem:[%s1428_s1 + $0x38] sm:$0xff] }
  0x51   : > { %v567_v10 = vadd.f32 %v565_v61, %v523_v50  ;;  %v663_v12 = vmul.f32 %v659_v0, %v659_v0  ;;  %v671_v13 = vadd.f32 %v669_v3, %v659_v0  ;;  %v673_v14 = vmul.f32 %v669_v3, %v669_v3  ;;  %v1551_v56 = vld [vmem:[%s1428_s1 + $0x78] sm:$0xff] }
  0x52   : > { %v605_v16 = vsub.f32 %v599_v4, %v603_v62  ;;  %v641_v17 = vadd.f32 %v639_v60, %v631_v5  ;;  %v645_v18 = vmul.f32 0.33333334, %v637_v6  ;;  %v683_v21 = vmul.f32 %v679_v8, %v679_v8  ;;  %v1554_v57 = vld [vmem:[%s1428_s1 + $0xb8] sm:$0xff]  ;;  %s434_s1 = scalar_lea.vmem %s1673_s5, %s1092_s14 }
  0x53   : > { %v675_v23 = vadd.f32 %v673_v14, %v663_v12  ;;  %v681_v24 = vadd.f32 %v679_v8, %v671_v13  ;;  %v696_v28 = vstv %s1509_s7  ;;  %v703_v29 = vunpack.c.l.bf16 %v1531_v9 }
  0x54   : > { %v609_v34 = vmul.f32 %v608_v19, %v605_v16  ;;  %v643_v35 = vmul.f32 0.33333334, %v641_v17  ;;  %v647_v36 = vmul.f32 %v645_v18, %v645_v18  ;;  %v713_v40 = vunpack.c.l.bf16 %v1534_v15 }
  0x55   : > { %v685_v41 = vadd.f32 %v683_v21, %v675_v23  ;;  %v689_v42 = vmul.f32 0.33333334, %v681_v24  ;;  %v707_v43 = vmul.f32 %v703_v29, %v703_v29  ;;  %v723_v45 = vunpack.c.l.bf16 %v1539_v22 }
  0x56   : > { %v611_v50 = vadd.f32 %v609_v34, %v567_v10  ;;  %v649_v51 = vsub.f32 %v643_v35, %v647_v36  ;;  %v715_v52 = vadd.f32 %v713_v40, %v703_v29  ;;  %v717_v54 = vmul.f32 %v713_v40, %v713_v40 }
  0x57   : > { %v687_v58 = vmul.f32 0.33333334, %v685_v41  ;;  %v691_v60 = vmul.f32 %v689_v42, %v689_v42  ;;  %v727_v61 = vmul.f32 %v723_v45, %v723_v45  ;;  %v740_v62 = vstv %s1527_s8 }
  0x58   : > { %v653_v0 = vmul.f32 %v652_v47, %v649_v51  ;;  %v719_v3 = vadd.f32 %v717_v54, %v707_v43  ;;  %v725_v4 = vadd.f32 %v723_v45, %v715_v52  ;;  %v747_v5 = vunpack.c.l.bf16 %v1548_v46 }
  0x59   : > { %v693_v6 = vsub.f32 %v687_v58, %v691_v60  ;;  %v757_v8 = vunpack.c.l.bf16 %v1551_v56  ;;  %v767_v10 = vunpack.c.l.bf16 %v1554_v57  ;;  %v784_v12 = vstv %s1536_s9 }
  0x5a   : > { %v655_v13 = vadd.f32 %v653_v0, %v611_v50  ;;  %v729_v14 = vadd.f32 %v727_v61, %v719_v3  ;;  %v733_v16 = vmul.f32 0.33333334, %v725_v4  ;;  %v751_v17 = vmul.f32 %v747_v5, %v747_v5 }
  0x5b   : > { %v697_v18 = vmul.f32 %v696_v28, %v693_v6  ;;  %v759_v21 = vadd.f32 %v757_v8, %v747_v5  ;;  %v761_v23 = vmul.f32 %v757_v8, %v757_v8  ;;  %v771_v24 = vmul.f32 %v767_v10, %v767_v10 }
  0x5c   : > { %v731_v29 = vmul.f32 0.33333334, %v729_v14  ;;  %v735_v34 = vmul.f32 %v733_v16, %v733_v16  ;;  %v444_v35 = vmul.f32 %v1449_v33, %v1449_v33  ;;  %v452_v36 = vadd.f32 %v1462_v39, %v1449_v33 }
  0x5d   : > { %v699_v40 = vadd.f32 %v697_v18, %v655_v13  ;;  %v763_v41 = vadd.f32 %v761_v23, %v751_v17  ;;  %v769_v42 = vadd.f32 %v767_v10, %v759_v21  ;;  %v454_v43 = vmul.f32 %v1462_v39, %v1462_v39 }
  0x5e   : > { %v737_v45 = vsub.f32 %v731_v29, %v735_v34  ;;  %v460_v50 = vunpack.c.h.bf16 %v1435_v26  ;;  %v484_v51 = vunpack.c.h.bf16 %v1441_v30  ;;  %v494_v52 = vunpack.c.h.bf16 %v1444_v31 }
  0x5f   : > { %v773_v54 = vadd.f32 %v771_v24, %v763_v41  ;;  %v777_v58 = vmul.f32 0.33333334, %v769_v42  ;;  %v456_v60 = vadd.f32 %v454_v43, %v444_v35  ;;  %v504_v61 = vunpack.c.h.bf16 %v1447_v32 }
  0x60   : > { %v741_v33 = vmul.f32 %v740_v62, %v737_v45  ;;  %v462_v0 = vadd.f32 %v460_v50, %v452_v36  ;;  %v464_v3 = vmul.f32 %v460_v50, %v460_v50  ;;  %v488_v4 = vmul.f32 %v484_v51, %v484_v51 }
  0x61   : > { %v775_v5 = vmul.f32 0.33333334, %v773_v54  ;;  %v779_v39 = vmul.f32 %v777_v58, %v777_v58  ;;  %v496_v6 = vadd.f32 %v494_v52, %v484_v51  ;;  %v498_v8 = vmul.f32 %v494_v52, %v494_v52 }
  0x62   : > { %v743_v26 = vadd.f32 %v741_v33, %v699_v40  ;;  %v466_v10 = vadd.f32 %v464_v3, %v456_v60  ;;  %v470_v30 = vmul.f32 0.33333334, %v462_v0  ;;  %v508_v13 = vmul.f32 %v504_v61, %v504_v61 }
  0x63   : > { %v781_v31 = vsub.f32 %v775_v5, %v779_v39  ;;  %v500_v14 = vadd.f32 %v498_v8, %v488_v4  ;;  %v506_v16 = vadd.f32 %v504_v61, %v496_v6  ;;  %v528_v17 = vunpack.c.h.bf16 %v1457_v37 }
  0x64   : > { %v468_v32 = vmul.f32 0.33333334, %v466_v10  ;;  %v472_v18 = vmul.f32 %v470_v30, %v470_v30  ;;  %v538_v21 = vunpack.c.h.bf16 %v1460_v38  ;;  %v548_v23 = vunpack.c.h.bf16 %v1465_v44 }
  0x65   : > { %v785_v24 = vmul.f32 %v784_v12, %v781_v31  ;;  %v510_v29 = vadd.f32 %v508_v13, %v500_v14  ;;  %v514_v34 = vmul.f32 0.33333334, %v506_v16  ;;  %v532_v35 = vmul.f32 %v528_v17, %v528_v17 }
  0x66   : > { %v474_v36 = vsub.f32 %v468_v32, %v472_v18  ;;  %v540_v40 = vadd.f32 %v538_v21, %v528_v17  ;;  %v542_v41 = vmul.f32 %v538_v21, %v538_v21  ;;  %v552_v42 = vmul.f32 %v548_v23, %v548_v23 }
  0x67   : > { %v1582_v43 = vadd.f32 %v785_v24, %v743_v26  ;;  %v512_v37 = vmul.f32 0.33333334, %v510_v29  ;;  %v516_v45 = vmul.f32 %v514_v34, %v514_v34  ;;  %v572_v50 = vunpack.c.h.bf16 %v1478_v1 }
  0x68   : > { %v478_v38 = vmul.f32 %v476_v59, %v474_v36  ;;  %v544_v44 = vadd.f32 %v542_v41, %v532_v35  ;;  %v550_v51 = vadd.f32 %v548_v23, %v540_v40  ;;  %v582_v52 = vunpack.c.h.bf16 %v1481_v2 }
  0x69   : > { %v789_v54 = vrot.slane %v1582_v43, 4  ;;  %v518_v58 = vsub.f32 %v512_v37, %v516_v45  ;;  %v576_v60 = vmul.f32 %v572_v50, %v572_v50  ;;  %v592_v61 = vunpack.c.h.bf16 %v1486_v7 }
  0x6a   : > { %v480_v33 = vadd.f32 %v478_v38, %v437_v53  ;;  %v554_v0 = vadd.f32 %v552_v42, %v544_v44  ;;  %v558_v3 = vmul.f32 0.33333334, %v550_v51  ;;  %v584_v4 = vadd.f32 %v582_v52, %v572_v50 }
  0x6b   : > { %v790_v5 = vmax.f32 %v1582_v43, %v789_v54  ;;  %v522_v1 = vmul.f32 %v520_v63, %v518_v58  ;;  %v586_v59 = vmul.f32 %v582_v52, %v582_v52  ;;  %v596_v39 = vmul.f32 %v592_v61, %v592_v61 }
  0x6c   : > { %v556_v6 = vmul.f32 0.33333334, %v554_v0  ;;  %v560_v2 = vmul.f32 %v558_v3, %v558_v3  ;;  %v594_v8 = vadd.f32 %v592_v61, %v584_v4  ;;  %v616_v26 = vunpack.c.h.bf16 %v1494_v20 }
  0x6d   : > { %v791_v10 = vrot.slane %v790_v5, 2  ;;  %v524_v30 = vadd.f32 %v522_v1, %v480_v33  ;;  %v588_v7 = vadd.f32 %v586_v59, %v576_v60  ;;  %v626_v53 = vunpack.c.h.bf16 %v1499_v25 }
  0x6e   : > { %v562_v13 = vsub.f32 %v556_v6, %v560_v2  ;;  %v602_v31 = vmul.f32 0.33333334, %v594_v8  ;;  %v620_v14 = vmul.f32 %v616_v26, %v616_v26  ;;  %v636_v16 = vunpack.c.h.bf16 %v1502_v27 }
  0x6f   : > { %v792_v17 = vmax.f32 %v790_v5, %v791_v10  ;;  %v598_v63 = vadd.f32 %v596_v39, %v588_v7  ;;  %v628_v32 = vadd.f32 %v626_v53, %v616_v26  ;;  %v630_v18 = vmul.f32 %v626_v53, %v626_v53 }
  0x70   : > { %v566_v21 = vmul.f32 %v564_v11, %v562_v13  ;;  %v604_v23 = vmul.f32 %v602_v31, %v602_v31  ;;  %v640_v24 = vmul.f32 %v636_v16, %v636_v16  ;;  %v660_v20 = vunpack.c.h.bf16 %v1515_v48 }
  0x71   : > { %v793_v29 = vrot.slane %v792_v17, 1  ;;  %v600_v34 = vmul.f32 0.33333334, %v598_v63  ;;  %v632_v35 = vadd.f32 %v630_v18, %v620_v14  ;;  %v638_v25 = vadd.f32 %v636_v16, %v628_v32 }
  0x72   : > { %v568_v36 = vadd.f32 %v566_v21, %v524_v30  ;;  %v664_v40 = vmul.f32 %v660_v20, %v660_v20  ;;  %v670_v41 = vunpack.c.h.bf16 %v1518_v49  ;;  %v680_v27 = vunpack.c.h.bf16 %v1521_v55 }
  0x73   : > { %v794_v42 = vmax.f32 %v792_v17, %v793_v29  ;;  %v606_v37 = vsub.f32 %v600_v34, %v604_v23  ;;  %v642_v45 = vadd.f32 %v640_v24, %v632_v35  ;;  %v646_v50 = vmul.f32 0.33333334, %v638_v25 }
  0x74   : > { %v672_v11 = vadd.f32 %v670_v41, %v660_v20  ;;  %v674_v38 = vmul.f32 %v670_v41, %v670_v41  ;;  %v684_v44 = vmul.f32 %v680_v27, %v680_v27  ;;  %v704_v48 = vunpack.c.h.bf16 %v1531_v9 }
  0x75   : > { %v801_v51 = vsub.f32 %v1582_v43, %v794_v42  ;;  %v610_v52 = vmul.f32 %v608_v19, %v606_v37  ;;  %v644_v54 = vmul.f32 0.33333334, %v642_v45  ;;  %v648_v58 = vmul.f32 %v646_v50, %v646_v50 }
  0x76   : > { %v676_v60 = vadd.f32 %v674_v38, %v664_v40  ;;  %v682_v49 = vadd.f32 %v680_v27, %v672_v11  ;;  %v708_v61 = vmul.f32 %v704_v48, %v704_v48  ;;  %v714_v55 = vunpack.c.h.bf16 %v1534_v15 }
  0x77   : > { %v803_v33 = vmul.f32 1.442695, %v801_v51  ;;  %v612_v0 = vadd.f32 %v610_v52, %v568_v36  ;;  %v650_v3 = vsub.f32 %v644_v54, %v648_v58  ;;  %v724_v4 = vunpack.c.h.bf16 %v1539_v22  ;;  %v824_v52 = vld [vmem:[%s417_s13 + $0x8] sm:$0x3]  ;;  %v823_v54 = vld [vmem:[%s417_s13] sm:$0xff] }
  0x78   : > { %v686_v5 = vadd.f32 %v684_v44, %v676_v60  ;;  %v690_v1 = vmul.f32 0.33333334, %v682_v49  ;;  %v716_v9 = vadd.f32 %v714_v55, %v704_v48  ;;  %v718_v59 = vmul.f32 %v714_v55, %v714_v55 }
  0x79   : > { %1200 = vpow2.f32 %v803_v33  ;;  %v654_v19 = vmul.f32 %v652_v47, %v650_v3  ;;  %v728_v43 = vmul.f32 %v724_v4, %v724_v4  ;;  %v748_v39 = vunpack.c.h.bf16 %v1548_v46 }
  0x7a   : > { %v688_v6 = vmul.f32 0.33333334, %v686_v5  ;;  %v692_v2 = vmul.f32 %v690_v1, %v690_v1  ;;  %v720_v8 = vadd.f32 %v718_v59, %v708_v61  ;;  %v726_v15 = vadd.f32 %v724_v4, %v716_v9 }
  0x7b   : > { %v752_v26 = vmul.f32 %v748_v39, %v748_v39  ;;  %v758_v10 = vunpack.c.h.bf16 %v1551_v56  ;;  %v768_v22 = vunpack.c.h.bf16 %v1554_v57  ;;  %v656_v13 = vadd.f32 %v654_v19, %v612_v0 }
  0x7c   : > { %v694_v30 = vsub.f32 %v688_v6, %v692_v2  ;;  %v730_v7 = vadd.f32 %v728_v43, %v720_v8  ;;  %v734_v53 = vmul.f32 0.33333334, %v726_v15  ;;  %v888_v2 = vlaneseq }
  0x7d   : > { %v760_v31 = vadd.f32 %v758_v10, %v748_v39  ;;  %v762_v47 = vmul.f32 %v758_v10, %v758_v10  ;;  %v772_v14 = vmul.f32 %v768_v22, %v768_v22  ;;  %vm915_vm5 = vcmask 1040384  }
  0x7e   : > { %v698_v16 = vmul.f32 %v696_v28, %v694_v30  ;;  %v732_v46 = vmul.f32 0.33333334, %v730_v7  ;;  %v736_v17 = vmul.f32 %v734_v53, %v734_v53  ;;  %v889_v8 = vshrl.u32 %v888_v2, 7 }
  0x7f   : > { %v1201_v63 = vpop.eup %1200  ;;  %v764_v32 = vadd.f32 %v762_v47, %v752_v26  ;;  %v770_v18 = vadd.f32 %v768_v22, %v760_v31  ;;  %v1268_v10 = vmov 0.0   ;;  %vm1633_vm6 = vcmp.lt.s32.totalorder %v888_v2, 256 }
  0x80   : > { %v807_v21 = vrot.slane %v1201_v63, 4  ;;  %v738_v56 = vsub.f32 %v732_v46, %v736_v17  ;;  %v700_v57 = vadd.f32 %v698_v16, %v656_v13 }
  0x81   : > { %v774_v23 = vadd.f32 %v772_v14, %v764_v32  ;;  %v778_v24 = vmul.f32 0.33333334, %v770_v18 }
  0x82   : > { %v808_v20 = vadd.f32 %v1201_v63, %v807_v21  ;;  %v742_v29 = vmul.f32 %v740_v62, %v738_v56 }
  0x83   : > { %v776_v34 = vmul.f32 0.33333334, %v774_v23  ;;  %v780_v35 = vmul.f32 %v778_v24, %v778_v24 }
  0x84   : > { %v809_v25 = vrot.slane %v808_v20, 2  ;;  %v744_v28 = vadd.f32 %v742_v29, %v700_v57 }
  0x85   : > { %v782_v36 = vsub.f32 %v776_v34, %v780_v35 }
  0x86   : > { %v810_v40 = vadd.f32 %v809_v25, %v808_v20 }
  0x87   : > { %v786_v41 = vmul.f32 %v784_v12, %v782_v36 }
  0x88   : > { %v811_v27 = vrot.slane %v810_v40, 1 }
  0x89   : > { %v788_v42 = vadd.f32 %v786_v41, %v744_v28 }
  0x8a   : > { %v812_v37 = vadd.f32 %v811_v27, %v810_v40 }
  0x8b   : > { %v795_v45 = vrot.slane %v788_v42, 4 }
  0x8c   : > { %1202 = vrcp.f32 %v812_v37 }
  0x8d   : > { %v796_v50 = vmax.f32 %v788_v42, %v795_v45 }
  0x8f   : > { %v797_v11 = vrot.slane %v796_v50, 2 }
  0x91   : > { %v798_v62 = vmax.f32 %v796_v50, %v797_v11 }
  0x92   : > { %v1203_v38 = vpop.eup %1202 }
  0x93   : > { %v821_v44 = vmul.f32 %v1203_v38, %v1201_v63  ;;  %v799_v48 = vrot.slane %v798_v62, 1 }
  0x95   : > { %1134 = vmatpush.msra.mxu2 %v821_v44  ;;  %v800_v12 = vmax.f32 %v798_v62, %v799_v48  ;;  %847 = vmatpush.msra.mxu0 %v821_v44 }
  0x96   : > { %1125 = vmatmul.msk.f32.vlgmr.msra.gmra.mxu2 %vm825_vm0, %v824_v52  ;;  %1124 = vmatmul.msk.f32.vlgmr.msra.gmra.mxu0 %vm825_vm0, %v823_v54 }
  0x97   : > { %v802_v51 = vsub.f32 %v788_v42, %v800_v12 }
  0x99   : > { %v805_v58 = vmul.f32 1.442695, %v802_v51 }
  0x9b   : > { %1204 = vpow2.f32 %v805_v58 }
  0xa1   : > { %v1205_v60 = vpop.eup %1204 }
  0xa2   : > { %v813_v49 = vrot.slane %v1205_v60, 4 }
  0xa4   : > { %v814_v61 = vadd.f32 %v1205_v60, %v813_v49 }
  0xa6   : > { %v815_v55 = vrot.slane %v814_v61, 2 }
  0xa8   : > { %v816_v33 = vadd.f32 %v815_v55, %v814_v61 }
  0xaa   : > { %v817_v0 = vrot.slane %v816_v33, 1 }
  0xac   : > { %v818_v3 = vadd.f32 %v817_v0, %v816_v33 }
  0xae   : > { %1206 = vrcp.f32 %v818_v3 }
  0xb4   : > { %v1207_v4 = vpop.eup %1206 }
  0xb5   : > { %v822_v5 = vmul.f32 %v1207_v4, %v1205_v60 }
  0xb7   : > { %1135 = vmatpush.msra.mxu3 %v822_v5  ;;  %870 = vmatpush.msra.mxu1 %v822_v5 }
  0xb8   : > { %1127 = vmatmul.msk.f32.vlgmr.msra.gmra.mxu3 %vm825_vm0, %v824_v52  ;;  %1126 = vmatmul.msk.f32.vlgmr.msra.gmra.mxu1 %vm825_vm0, %v823_v54 }
 0x113   : > { %v849_v31 = vpop.f32.mrf.mxu0 }
 0x119   : > { %v852_v1 = vpop.f32.mrf.mxu2 }
 0x11a   : > { %v1139_v9 = vceil.f32 %v852_v1  ;;  %v1140_v59 = vfloor.f32 %v852_v1  ;;  %vm1138_vm1 = vcmp.lt.s32.totalorder %v852_v1, 0 }
 0x11c   : > { %v1141_v19 = vsel %vm1138_vm1, %v1139_v9, %v1140_v59 }
 0x11d   : > { %v1142_v43 = vcvt.f32.s32 %v1141_v19 }
 0x11f   : > { %vm880_vm2 = vcmp.gt.s32.totalorder %v1142_v43, 0 }
 0x120   : > { %v881_v39 = vsel %vm880_vm2, %v1142_v43, 0 }
 0x121   : > { %vm884_vm3 = vcmp.lt.s32.totalorder %v881_v39, 7 }
 0x122   : > { %v885_v6 = vsel %vm884_vm3, %v881_v39, 7 }
 0x123   : > { %v890_v15 = vperm.slane %v885_v6, 1 }
 0x125   : > { %vm892_vm4 = vcmp.eq.s32.totalorder %v889_v8, %v890_v15 }
 0x126   : > { %v1128_v22 = vsel %vm892_vm4, 1.0, %v1268_v10 }
 0x127   : > { %v898_v46 = vmul.f32 %v1128_v22, %v849_v31 }
 0x129   : > { %v900_v63 = vrot.slane %v898_v46, 4 }
 0x12b   : > { %v901_v56 = vadd.f32 %v900_v63, %v898_v46 }
 0x12d   : > { %v902_v24 = vrot.slane %v901_v56, 2 }
 0x12f   : > { %v903_v34 = vadd.f32 %v902_v24, %v901_v56 }
 0x131   : > { %v904_v28 = vrot.slane %v903_v34, 1 }
 0x133   : > { %v905_v41 = vadd.f32 %v904_v28, %v903_v34 }
 0x135   : > { %v872_v21 = vpop.f32.mrf.mxu1 }
 0x13b   : > { %v875_v26 = vpop.f32.mrf.mxu3 }
 0x13c   : > { %vm1143_vm7 = vcmp.lt.s32.totalorder %v875_v26, 0  ;;  %v1144_v7 = vceil.f32 %v875_v26  ;;  %v1145_v53 = vfloor.f32 %v875_v26  ;;  %v914_v13 = vrot.slane %v875_v26, 7 }
 0x13e   : > { %v1146_v47 = vsel %vm1143_vm7, %v1144_v7, %v1145_v53  ;;  %v916_v14 = vsel %vm915_vm5, %v852_v1, %v914_v13 }
 0x13f   : > { %v1147_v16 = vcvt.f32.s32 %v1146_v47  ;;  %922 = vst.msk [vmem:[%s425_s17] sm:$0x3] %vm1633_vm6, %v916_v14 }
 0x141   : > { %vm882_vm8 = vcmp.gt.s32.totalorder %v1147_v16, 0 }
 0x142   : > { %v883_v17 = vsel %vm882_vm8, %v1147_v16, 0 }
 0x143   : > { %vm886_vm9 = vcmp.lt.s32.totalorder %v883_v17, 7 }
 0x144   : > { %v887_v32 = vsel %vm886_vm9, %v883_v17, 7 }
 0x145   : > { %v891_v18 = vperm.slane %v887_v32, 1 }
 0x147   : > { %vm893_vm10 = vcmp.eq.s32.totalorder %v889_v8, %v891_v18 }
 0x148   : > { %v1129_v57 = vsel %vm893_vm10, 1.0, %v1268_v10 }
 0x149   : > { %v899_v23 = vmul.f32 %v1129_v57, %v872_v21 }
 0x14b   : > { %v906_v20 = vrot.slane %v899_v23, 4 }
 0x14d   : > { %v907_v29 = vadd.f32 %v906_v20, %v899_v23 }
 0x14f   : > { %v908_v35 = vrot.slane %v907_v29, 2 }
 0x151   : > { %v909_v25 = vadd.f32 %v908_v35, %v907_v29 }
 0x153   : > { %v910_v36 = vrot.slane %v909_v25, 1 }
 0x155   : > { %v911_v40 = vadd.f32 %v910_v36, %v909_v25 }
 0x157   : > { %v925_v27 = vrot.slane %v911_v40, 7 }
 0x159   : > { %v926_v42 = vsel %vm915_vm5, %v905_v41, %v925_v27 }
 0x15a   : > { %928 = vst.msk [vmem:[%s434_s1] sm:$0x3] %vm1633_vm6, %v926_v42 }
 0x15b PF: > { %s18_s24 = sadd.s32 1, %s1265_s24   ;;  %s1679_s20 = smov %s1253_s21 }
 0x15c   : > { %p15_p13 = scmp.ge.s32.totalorder %s18_s24, 4   ;;  %s1680_s21 = smov %s1352_s6 }
 0x15d   : > { %s1681_s22 = smov %s1261_s23  ;;  %s1682_s23 = smov %s1684_s25 }
 0x15e   :  { %17 = sbr.rel (!%p15_p13) target bundleno = 5 (0x5), region = 152 }
 0x163   :  { %980 = vsyncpa [#allocation4], 1 }
 0x164   :  { %982 = vsyncpa [#allocation4 + $0x1], 1 }

</bundles_post_ra>
